<compile_context>
chip_gen: v5e
topology: v5e:2x2
jax: 0.10.0
libtpu: 0.0.40
codegen_flags: <defaults>
</compile_context>

<pallas_src>
import functools

import jax
import jax.numpy as jnp
from jax.experimental import pallas as pl
from jax.experimental.pallas import tpu as pltpu


def _round_up(x, m):
    return (x + m - 1) // m * m


def _lane_roll(x, shift):
    """result[:, i] = x[:, (i + shift) % n] for a static Python int shift.

    Lowers to two static lane slices + a lane concat (cheap XLU work); the
    wrapped positions only ever land on halo pixels, which get masked to zero.
    """
    n = x.shape[-1]
    k = shift % n
    if k == 0:
        return x
    return jnp.concatenate([x[:, k:], x[:, :k]], axis=-1)


def _fcnet_kernel(x_ref, mask_ref, *rest, n_layers, wp, relu_flags):
    """Fused FCNet conv stack for one batch element.

    x_ref   : (C0p, S)   zero-haloed, channel-padded input, S = Hp*Wp
    mask_ref: (1, S)     1.0 on interior pixels, 0.0 on the halo
    rest    : w_0, b_0, ..., w_{L-1}, b_{L-1}, out_ref, col_ref
       w_i    : (Couti_p, 9*Cini_p)  im2col-packed weights
       b_i    : (Couti_p, 1)
       out_ref: (Clast_p, S)
       col_ref: (9*Cmax_p, S) f32    im2col scratch (VMEM)
    """
    w_refs = [rest[2 * i] for i in range(n_layers)]
    b_refs = [rest[2 * i + 1] for i in range(n_layers)]
    out_ref = rest[2 * n_layers]
    col_ref = rest[2 * n_layers + 1]

    # Tap offsets on the flattened padded grid, (ky, kx) raster order.  This
    # must match the 9*Cin ordering of the packed weights.
    shifts = tuple(dy * wp + dx for dy in (-1, 0, 1) for dx in (-1, 0, 1))
    mask = mask_ref[...]                               # (1, S)

    cur = x_ref[...].astype(jnp.float32)               # (Cin_p, S), zero halo
    for i in range(n_layers):
        cin = cur.shape[0]
        # im2col: stack the 9 lane-shifted taps along sublanes (static,
        # 8-aligned offsets -> plain stores, no relayout).
        for t, d in enumerate(shifts):
            col_ref[t * cin:(t + 1) * cin, :] = _lane_roll(cur, d)
        # Single MXU matmul per layer: (Cout_p, 9*Cin_p) @ (9*Cin_p, S).
        y = jnp.dot(w_refs[i][...], col_ref[0:9 * cin, :],
                    preferred_element_type=jnp.float32)
        y = y + b_refs[i][...]                         # (Cout_p, 1) broadcast
        if relu_flags[i]:
            y = jnp.maximum(y, 0.0)
        y = y * mask                                   # re-zero halo pixels
        if i + 1 < n_layers:
            cur = y                                    # stays in VMEM/vregs
        else:
            out_ref[...] = y.astype(out_ref.dtype)


def _pack_conv_params(w, b, cin_p, cout_p):
    """PyTorch-layout (Cout, Cin, 3, 3) weights -> (Cout_p, 9*Cin_p) im2col."""
    cout, cin = w.shape[0], w.shape[1]
    wt = jnp.transpose(w, (0, 2, 3, 1)).reshape(cout, 9, cin)   # [o, ky*3+kx, c]
    wt = jnp.pad(wt, ((0, cout_p - cout), (0, 0), (0, cin_p - cin)))
    wt = wt.reshape(cout_p, 9 * cin_p)
    bp = jnp.pad(b, (0, cout_p - cout)).reshape(cout_p, 1)
    return wt, bp


def fcnet_forward(x_nchw, params, preact=False, last_fc_block=False):
    """FCNet.forward (sequential conv3x3+ReLU stack).  Input/output NCHW."""
    n, c, h, w = x_nchw.shape
    hp, wpad = h + 2, w + 2
    s = hp * wpad
    n_layers = len(params)

    x = jnp.maximum(x_nchw, 0.0) if preact else x_nchw

    # Channel plan, padded up to sublane multiples of 8.
    couts = [p[0].shape[0] for p in params]
    cins = [c] + couts[:-1]
    cin_ps = [_round_up(ci, 8) for ci in cins]
    cout_ps = [_round_up(co, 8) for co in couts]
    c0p, clast_p = cin_ps[0], cout_ps[-1]
    cmax_p = max(cin_ps)

    # Zero halo + zero channel padding, flattened to (N, C0p, Hp*Wp).
    xp = jnp.zeros((n, c0p, hp, wpad), x.dtype)
    xp = xp.at[:, :c, 1:h + 1, 1:w + 1].set(x)
    xp = xp.reshape(n, c0p, s)

    # Interior mask: re-zeroes the halo between layers inside the kernel.
    mask = jnp.zeros((hp, wpad), jnp.float32).at[1:h + 1, 1:w + 1].set(1.0)
    mask = mask.reshape(1, s)

    packed = []
    for (wgt, bias), ci_p, co_p in zip(params, cin_ps, cout_ps):
        packed.extend(_pack_conv_params(wgt, bias, ci_p, co_p))

    relu_flags = tuple([True] * (n_layers - 1) + [not last_fc_block])
    vmem = pltpu.MemorySpace.VMEM

    out = pl.pallas_call(
        functools.partial(_fcnet_kernel, n_layers=n_layers, wp=wpad,
                          relu_flags=relu_flags),
        out_shape=jax.ShapeDtypeStruct((n, clast_p, s), x.dtype),
        grid=(n,),
        in_specs=[pl.BlockSpec((None, c0p, s), lambda b: (b, 0, 0)),
                  pl.BlockSpec(memory_space=vmem)]
                 + [pl.BlockSpec(memory_space=vmem) for _ in packed],
        out_specs=pl.BlockSpec((None, clast_p, s), lambda b: (b, 0, 0)),
        scratch_shapes=[pltpu.VMEM((9 * cmax_p, s), jnp.float32)],
        compiler_params=pltpu.CompilerParams(
            dimension_semantics=("parallel",)),
    )(xp, mask, *packed)

    # Lane-dense kernel output -> NCHW: free reshape + tiny interior slice.
    return out.reshape(n, clast_p, hp, wpad)[:, :c, 1:h + 1, 1:w + 1]


def init_fcnet_params(key, in_ch, idim, nhidden, coeff=0.98):
    """Deterministic synthetic parameters, PyTorch Conv2d layout (Cout,Cin,3,3).

    Channel plan mirrors FCNet: in_ch -> idim (x nhidden) -> in_ch.
    """
    dims = [in_ch] + [idim] * nhidden + [in_ch]
    params = []
    for i in range(len(dims) - 1):
        cin, cout = dims[i], dims[i + 1]
        key, kw, kb = jax.random.split(key, 3)
        bound = 1.0 / jnp.sqrt(jnp.float32(cin * 9))
        w = jax.random.uniform(kw, (cout, cin, 3, 3), jnp.float32, -bound, bound)
        b = jax.random.uniform(kb, (cout,), jnp.float32, -bound, bound)
        # TODO(synk): the real lipschitz_layer (induced-norm spectral conv) runs a
        # power iteration to normalize by the operator norm; stand in with a
        # deterministic Frobenius-norm rescale to coeff.
        w = coeff * w / jnp.maximum(jnp.sqrt(jnp.sum(w * w)), 1e-6)
        params.append((w, b))
    return params


def fcnet_reference(x_nchw, params, preact=False, last_fc_block=False):
    """Pure-JAX reference (explicit zero-padded 3x3 cross-correlation)."""
    x = jnp.maximum(x_nchw, 0.0) if preact else x_nchw
    n_layers = len(params)
    for i, (w, b) in enumerate(params):
        xp = jnp.pad(x, ((0, 0), (0, 0), (1, 1), (1, 1)))
        h, wd = x.shape[2], x.shape[3]
        y = b[None, :, None, None]
        for ky in range(3):
            for kx in range(3):
                y = y + jnp.einsum('oc,nchw->nohw', w[:, :, ky, kx],
                                   xp[:, :, ky:ky + h, kx:kx + wd],
                                   precision=jax.lax.Precision.HIGHEST)
        if (i < n_layers - 1) or (not last_fc_block):
            y = jnp.maximum(y, 0.0)
        x = y
    return x


if __name__ == "__main__":
    # Module config (small, consistent with FCNet): input_shape=(4,16,16),
    # idim=32, nhidden=2, coeff=0.98, preact=False, dropout=0,
    # last_fc_block=False, batch=2.
    key = jax.random.PRNGKey(0)
    kx, kp = jax.random.split(key)

    batch, c, h, w = 2, 4, 16, 16
    idim, nhidden, coeff = 32, 2, 0.98

    x = jax.random.normal(kx, (batch, c, h, w), jnp.float32)   # NCHW, like PyTorch
    params = init_fcnet_params(kp, c, idim, nhidden, coeff)

    fwd = jax.jit(lambda xx, pp: fcnet_forward(xx, pp, preact=False,
                                               last_fc_block=False))
    out = jax.block_until_ready(fwd(x, params))

    assert out.shape == (batch, c, h, w), out.shape
    assert out.dtype == jnp.float32

    ref = fcnet_reference(x, params, preact=False, last_fc_block=False)
    err = float(jnp.max(jnp.abs(out - ref)))
    assert err < 2e-3, f"max abs err {err}"
    print("KERNEL_OK")
</pallas_src>

<mosaic_0001>
module attributes {stable_mosaic.version = 11 : i64} {
  func.func @_fcnet_kernel(%arg0: i32, %arg1: memref<1x8x324xf32, #tpu.memory_space<vmem>>, %arg2: memref<1x324xf32, #tpu.memory_space<vmem>>, %arg3: memref<32x72xf32, #tpu.memory_space<vmem>>, %arg4: memref<32x1xf32, #tpu.memory_space<vmem>>, %arg5: memref<32x288xf32, #tpu.memory_space<vmem>>, %arg6: memref<32x1xf32, #tpu.memory_space<vmem>>, %arg7: memref<8x288xf32, #tpu.memory_space<vmem>>, %arg8: memref<8x1xf32, #tpu.memory_space<vmem>>, %arg9: memref<1x8x324xf32, #tpu.memory_space<vmem>>, %arg10: memref<288x324xf32, #tpu.memory_space<vmem>>) attributes {dimension_semantics = [#tpu.dimension_semantics<parallel>], iteration_bounds = array<i64: 2>, scalar_prefetch = 0 : i64, scratch_operands = 1 : i64, tpu.core_type = #tpu.core_type<tc>, window_params = [{transform_indices = @transform_0, window_bounds = array<i64: 1, 8, 324>}, {pipeline_mode = #tpu.pipeline_mode<synchronous>, transform_indices = @transform_1, window_bounds = array<i64: 1, 324>}, {pipeline_mode = #tpu.pipeline_mode<synchronous>, transform_indices = @transform_2, window_bounds = array<i64: 32, 72>}, {pipeline_mode = #tpu.pipeline_mode<synchronous>, transform_indices = @transform_3, window_bounds = array<i64: 32, 1>}, {pipeline_mode = #tpu.pipeline_mode<synchronous>, transform_indices = @transform_4, window_bounds = array<i64: 32, 288>}, {pipeline_mode = #tpu.pipeline_mode<synchronous>, transform_indices = @transform_5, window_bounds = array<i64: 32, 1>}, {pipeline_mode = #tpu.pipeline_mode<synchronous>, transform_indices = @transform_6, window_bounds = array<i64: 8, 288>}, {pipeline_mode = #tpu.pipeline_mode<synchronous>, transform_indices = @transform_7, window_bounds = array<i64: 8, 1>}, {transform_indices = @transform_8, window_bounds = array<i64: 1, 8, 324>}]} {
    %c0 = arith.constant 0 : index
    %c0_0 = arith.constant 0 : index
    %0 = vector.load %arg2[%c0, %c0_0] : memref<1x324xf32, #tpu.memory_space<vmem>>, vector<1x324xf32>
    %c0_1 = arith.constant 0 : index
    %c0_2 = arith.constant 0 : index
    %c0_3 = arith.constant 0 : index
    %1 = vector.load %arg1[%c0_1, %c0_2, %c0_3] : memref<1x8x324xf32, #tpu.memory_space<vmem>>, vector<1x8x324xf32>
    %2 = vector.shape_cast %1 : vector<1x8x324xf32> to vector<8x324xf32>
    %3 = vector.extract_strided_slice %2 {offsets = [0, 305], sizes = [8, 19], strides = [1, 1]} : vector<8x324xf32> to vector<8x19xf32>
    %4 = vector.extract_strided_slice %2 {offsets = [0, 0], sizes = [8, 305], strides = [1, 1]} : vector<8x324xf32> to vector<8x305xf32>
    %5 = tpu.concatenate %3, %4 in 1 : vector<8x19xf32>, vector<8x305xf32> -> vector<8x324xf32>
    %c0_4 = arith.constant 0 : index
    %c0_5 = arith.constant 0 : index
    %6 = vector.load %arg10[%c0_4, %c0_5] : memref<288x324xf32, #tpu.memory_space<vmem>>, vector<8x324xf32>
    tpu.vector_store %arg10[%c0_4, %c0_5], %5 {strides = array<i32>} : memref<288x324xf32, #tpu.memory_space<vmem>>, vector<8x324xf32>,
    %7 = vector.extract_strided_slice %2 {offsets = [0, 306], sizes = [8, 18], strides = [1, 1]} : vector<8x324xf32> to vector<8x18xf32>
    %8 = vector.extract_strided_slice %2 {offsets = [0, 0], sizes = [8, 306], strides = [1, 1]} : vector<8x324xf32> to vector<8x306xf32>
    %9 = tpu.concatenate %7, %8 in 1 : vector<8x18xf32>, vector<8x306xf32> -> vector<8x324xf32>
    %c8 = arith.constant 8 : index
    %c0_6 = arith.constant 0 : index
    %10 = vector.load %arg10[%c8, %c0_6] : memref<288x324xf32, #tpu.memory_space<vmem>>, vector<8x324xf32>
    tpu.vector_store %arg10[%c8, %c0_6], %9 {strides = array<i32>} : memref<288x324xf32, #tpu.memory_space<vmem>>, vector<8x324xf32>,
    %11 = vector.extract_strided_slice %2 {offsets = [0, 307], sizes = [8, 17], strides = [1, 1]} : vector<8x324xf32> to vector<8x17xf32>
    %12 = vector.extract_strided_slice %2 {offsets = [0, 0], sizes = [8, 307], strides = [1, 1]} : vector<8x324xf32> to vector<8x307xf32>
    %13 = tpu.concatenate %11, %12 in 1 : vector<8x17xf32>, vector<8x307xf32> -> vector<8x324xf32>
    %c16 = arith.constant 16 : index
    %c0_7 = arith.constant 0 : index
    %14 = vector.load %arg10[%c16, %c0_7] : memref<288x324xf32, #tpu.memory_space<vmem>>, vector<8x324xf32>
    tpu.vector_store %arg10[%c16, %c0_7], %13 {strides = array<i32>} : memref<288x324xf32, #tpu.memory_space<vmem>>, vector<8x324xf32>,
    %15 = vector.extract_strided_slice %2 {offsets = [0, 323], sizes = [8, 1], strides = [1, 1]} : vector<8x324xf32> to vector<8x1xf32>
    %16 = vector.extract_strided_slice %2 {offsets = [0, 0], sizes = [8, 323], strides = [1, 1]} : vector<8x324xf32> to vector<8x323xf32>
    %17 = tpu.concatenate %15, %16 in 1 : vector<8x1xf32>, vector<8x323xf32> -> vector<8x324xf32>
    %c24 = arith.constant 24 : index
    %c0_8 = arith.constant 0 : index
    %18 = vector.load %arg10[%c24, %c0_8] : memref<288x324xf32, #tpu.memory_space<vmem>>, vector<8x324xf32>
    tpu.vector_store %arg10[%c24, %c0_8], %17 {strides = array<i32>} : memref<288x324xf32, #tpu.memory_space<vmem>>, vector<8x324xf32>,
    %c32 = arith.constant 32 : index
    %c0_9 = arith.constant 0 : index
    %19 = vector.load %arg10[%c32, %c0_9] : memref<288x324xf32, #tpu.memory_space<vmem>>, vector<8x324xf32>
    tpu.vector_store %arg10[%c32, %c0_9], %2 {strides = array<i32>} : memref<288x324xf32, #tpu.memory_space<vmem>>, vector<8x324xf32>,
    %20 = vector.extract_strided_slice %2 {offsets = [0, 1], sizes = [8, 323], strides = [1, 1]} : vector<8x324xf32> to vector<8x323xf32>
    %21 = vector.extract_strided_slice %2 {offsets = [0, 0], sizes = [8, 1], strides = [1, 1]} : vector<8x324xf32> to vector<8x1xf32>
    %22 = tpu.concatenate %20, %21 in 1 : vector<8x323xf32>, vector<8x1xf32> -> vector<8x324xf32>
    %c40 = arith.constant 40 : index
    %c0_10 = arith.constant 0 : index
    %23 = vector.load %arg10[%c40, %c0_10] : memref<288x324xf32, #tpu.memory_space<vmem>>, vector<8x324xf32>
    tpu.vector_store %arg10[%c40, %c0_10], %22 {strides = array<i32>} : memref<288x324xf32, #tpu.memory_space<vmem>>, vector<8x324xf32>,
    %24 = vector.extract_strided_slice %2 {offsets = [0, 17], sizes = [8, 307], strides = [1, 1]} : vector<8x324xf32> to vector<8x307xf32>
    %25 = vector.extract_strided_slice %2 {offsets = [0, 0], sizes = [8, 17], strides = [1, 1]} : vector<8x324xf32> to vector<8x17xf32>
    %26 = tpu.concatenate %24, %25 in 1 : vector<8x307xf32>, vector<8x17xf32> -> vector<8x324xf32>
    %c48 = arith.constant 48 : index
    %c0_11 = arith.constant 0 : index
    %27 = vector.load %arg10[%c48, %c0_11] : memref<288x324xf32, #tpu.memory_space<vmem>>, vector<8x324xf32>
    tpu.vector_store %arg10[%c48, %c0_11], %26 {strides = array<i32>} : memref<288x324xf32, #tpu.memory_space<vmem>>, vector<8x324xf32>,
    %28 = vector.extract_strided_slice %2 {offsets = [0, 18], sizes = [8, 306], strides = [1, 1]} : vector<8x324xf32> to vector<8x306xf32>
    %29 = vector.extract_strided_slice %2 {offsets = [0, 0], sizes = [8, 18], strides = [1, 1]} : vector<8x324xf32> to vector<8x18xf32>
    %30 = tpu.concatenate %28, %29 in 1 : vector<8x306xf32>, vector<8x18xf32> -> vector<8x324xf32>
    %c56 = arith.constant 56 : index
    %c0_12 = arith.constant 0 : index
    %31 = vector.load %arg10[%c56, %c0_12] : memref<288x324xf32, #tpu.memory_space<vmem>>, vector<8x324xf32>
    tpu.vector_store %arg10[%c56, %c0_12], %30 {strides = array<i32>} : memref<288x324xf32, #tpu.memory_space<vmem>>, vector<8x324xf32>,
    %32 = vector.extract_strided_slice %2 {offsets = [0, 19], sizes = [8, 305], strides = [1, 1]} : vector<8x324xf32> to vector<8x305xf32>
    %33 = vector.extract_strided_slice %2 {offsets = [0, 0], sizes = [8, 19], strides = [1, 1]} : vector<8x324xf32> to vector<8x19xf32>
    %34 = tpu.concatenate %32, %33 in 1 : vector<8x305xf32>, vector<8x19xf32> -> vector<8x324xf32>
    %c64 = arith.constant 64 : index
    %c0_13 = arith.constant 0 : index
    %35 = vector.load %arg10[%c64, %c0_13] : memref<288x324xf32, #tpu.memory_space<vmem>>, vector<8x324xf32>
    tpu.vector_store %arg10[%c64, %c0_13], %34 {strides = array<i32>} : memref<288x324xf32, #tpu.memory_space<vmem>>, vector<8x324xf32>,
    %c0_14 = arith.constant 0 : index
    %c0_15 = arith.constant 0 : index
    %36 = vector.load %arg3[%c0_14, %c0_15] : memref<32x72xf32, #tpu.memory_space<vmem>>, vector<32x72xf32>
    %c0_16 = arith.constant 0 : index
    %c0_17 = arith.constant 0 : index
    %37 = vector.load %arg10[%c0_16, %c0_17] : memref<288x324xf32, #tpu.memory_space<vmem>>, vector<72x324xf32>
    %cst = arith.constant dense<0.000000e+00> : vector<32x324xf32>
    %38 = tpu.matmul %36, %37, %cst {dimension_numbers = #tpu.dot_dimension_numbers<[1], [0], [0], [1], [0, 0, 1, 1], [], []>} : vector<32x72xf32>, vector<72x324xf32>, vector<32x324xf32> -> vector<32x324xf32>
    %c0_18 = arith.constant 0 : index
    %c0_19 = arith.constant 0 : index
    %39 = vector.load %arg4[%c0_18, %c0_19] : memref<32x1xf32, #tpu.memory_space<vmem>>, vector<32x1xf32>
    %40 = vector.broadcast %39 : vector<32x1xf32> to vector<32x324xf32>
    %41 = arith.addf %38, %40 : vector<32x324xf32>
    %cst_20 = arith.constant 0.000000e+00 : f32
    %42 = vector.broadcast %cst_20 : f32 to vector<32x324xf32>
    %43 = arith.maximumf %41, %42 : vector<32x324xf32>
    %44 = vector.broadcast %0 : vector<1x324xf32> to vector<32x324xf32>
    %45 = arith.mulf %43, %44 : vector<32x324xf32>
    %46 = vector.extract_strided_slice %45 {offsets = [0, 305], sizes = [32, 19], strides = [1, 1]} : vector<32x324xf32> to vector<32x19xf32>
    %47 = vector.extract_strided_slice %45 {offsets = [0, 0], sizes = [32, 305], strides = [1, 1]} : vector<32x324xf32> to vector<32x305xf32>
    %48 = tpu.concatenate %46, %47 in 1 : vector<32x19xf32>, vector<32x305xf32> -> vector<32x324xf32>
    %c0_21 = arith.constant 0 : index
    %c0_22 = arith.constant 0 : index
    %49 = vector.load %arg10[%c0_21, %c0_22] : memref<288x324xf32, #tpu.memory_space<vmem>>, vector<32x324xf32>
    tpu.vector_store %arg10[%c0_21, %c0_22], %48 {strides = array<i32>} : memref<288x324xf32, #tpu.memory_space<vmem>>, vector<32x324xf32>,
    %50 = vector.extract_strided_slice %45 {offsets = [0, 306], sizes = [32, 18], strides = [1, 1]} : vector<32x324xf32> to vector<32x18xf32>
    %51 = vector.extract_strided_slice %45 {offsets = [0, 0], sizes = [32, 306], strides = [1, 1]} : vector<32x324xf32> to vector<32x306xf32>
    %52 = tpu.concatenate %50, %51 in 1 : vector<32x18xf32>, vector<32x306xf32> -> vector<32x324xf32>
    %c32_23 = arith.constant 32 : index
    %c0_24 = arith.constant 0 : index
    %53 = vector.load %arg10[%c32_23, %c0_24] : memref<288x324xf32, #tpu.memory_space<vmem>>, vector<32x324xf32>
    tpu.vector_store %arg10[%c32_23, %c0_24], %52 {strides = array<i32>} : memref<288x324xf32, #tpu.memory_space<vmem>>, vector<32x324xf32>,
    %54 = vector.extract_strided_slice %45 {offsets = [0, 307], sizes = [32, 17], strides = [1, 1]} : vector<32x324xf32> to vector<32x17xf32>
    %55 = vector.extract_strided_slice %45 {offsets = [0, 0], sizes = [32, 307], strides = [1, 1]} : vector<32x324xf32> to vector<32x307xf32>
    %56 = tpu.concatenate %54, %55 in 1 : vector<32x17xf32>, vector<32x307xf32> -> vector<32x324xf32>
    %c64_25 = arith.constant 64 : index
    %c0_26 = arith.constant 0 : index
    %57 = vector.load %arg10[%c64_25, %c0_26] : memref<288x324xf32, #tpu.memory_space<vmem>>, vector<32x324xf32>
    tpu.vector_store %arg10[%c64_25, %c0_26], %56 {strides = array<i32>} : memref<288x324xf32, #tpu.memory_space<vmem>>, vector<32x324xf32>,
    %58 = vector.extract_strided_slice %45 {offsets = [0, 323], sizes = [32, 1], strides = [1, 1]} : vector<32x324xf32> to vector<32x1xf32>
    %59 = vector.extract_strided_slice %45 {offsets = [0, 0], sizes = [32, 323], strides = [1, 1]} : vector<32x324xf32> to vector<32x323xf32>
    %60 = tpu.concatenate %58, %59 in 1 : vector<32x1xf32>, vector<32x323xf32> -> vector<32x324xf32>
    %c96 = arith.constant 96 : index
    %c0_27 = arith.constant 0 : index
    %61 = vector.load %arg10[%c96, %c0_27] : memref<288x324xf32, #tpu.memory_space<vmem>>, vector<32x324xf32>
    tpu.vector_store %arg10[%c96, %c0_27], %60 {strides = array<i32>} : memref<288x324xf32, #tpu.memory_space<vmem>>, vector<32x324xf32>,
    %c128 = arith.constant 128 : index
    %c0_28 = arith.constant 0 : index
    %62 = vector.load %arg10[%c128, %c0_28] : memref<288x324xf32, #tpu.memory_space<vmem>>, vector<32x324xf32>
    tpu.vector_store %arg10[%c128, %c0_28], %45 {strides = array<i32>} : memref<288x324xf32, #tpu.memory_space<vmem>>, vector<32x324xf32>,
    %63 = vector.extract_strided_slice %45 {offsets = [0, 1], sizes = [32, 323], strides = [1, 1]} : vector<32x324xf32> to vector<32x323xf32>
    %64 = vector.extract_strided_slice %45 {offsets = [0, 0], sizes = [32, 1], strides = [1, 1]} : vector<32x324xf32> to vector<32x1xf32>
    %65 = tpu.concatenate %63, %64 in 1 : vector<32x323xf32>, vector<32x1xf32> -> vector<32x324xf32>
    %c160 = arith.constant 160 : index
    %c0_29 = arith.constant 0 : index
    %66 = vector.load %arg10[%c160, %c0_29] : memref<288x324xf32, #tpu.memory_space<vmem>>, vector<32x324xf32>
    tpu.vector_store %arg10[%c160, %c0_29], %65 {strides = array<i32>} : memref<288x324xf32, #tpu.memory_space<vmem>>, vector<32x324xf32>,
    %67 = vector.extract_strided_slice %45 {offsets = [0, 17], sizes = [32, 307], strides = [1, 1]} : vector<32x324xf32> to vector<32x307xf32>
    %68 = vector.extract_strided_slice %45 {offsets = [0, 0], sizes = [32, 17], strides = [1, 1]} : vector<32x324xf32> to vector<32x17xf32>
    %69 = tpu.concatenate %67, %68 in 1 : vector<32x307xf32>, vector<32x17xf32> -> vector<32x324xf32>
    %c192 = arith.constant 192 : index
    %c0_30 = arith.constant 0 : index
    %70 = vector.load %arg10[%c192, %c0_30] : memref<288x324xf32, #tpu.memory_space<vmem>>, vector<32x324xf32>
    tpu.vector_store %arg10[%c192, %c0_30], %69 {strides = array<i32>} : memref<288x324xf32, #tpu.memory_space<vmem>>, vector<32x324xf32>,
    %71 = vector.extract_strided_slice %45 {offsets = [0, 18], sizes = [32, 306], strides = [1, 1]} : vector<32x324xf32> to vector<32x306xf32>
    %72 = vector.extract_strided_slice %45 {offsets = [0, 0], sizes = [32, 18], strides = [1, 1]} : vector<32x324xf32> to vector<32x18xf32>
    %73 = tpu.concatenate %71, %72 in 1 : vector<32x306xf32>, vector<32x18xf32> -> vector<32x324xf32>
    %c224 = arith.constant 224 : index
    %c0_31 = arith.constant 0 : index
    %74 = vector.load %arg10[%c224, %c0_31] : memref<288x324xf32, #tpu.memory_space<vmem>>, vector<32x324xf32>
    tpu.vector_store %arg10[%c224, %c0_31], %73 {strides = array<i32>} : memref<288x324xf32, #tpu.memory_space<vmem>>, vector<32x324xf32>,
    %75 = vector.extract_strided_slice %45 {offsets = [0, 19], sizes = [32, 305], strides = [1, 1]} : vector<32x324xf32> to vector<32x305xf32>
    %76 = vector.extract_strided_slice %45 {offsets = [0, 0], sizes = [32, 19], strides = [1, 1]} : vector<32x324xf32> to vector<32x19xf32>
    %77 = tpu.concatenate %75, %76 in 1 : vector<32x305xf32>, vector<32x19xf32> -> vector<32x324xf32>
    %c256 = arith.constant 256 : index
    %c0_32 = arith.constant 0 : index
    %78 = vector.load %arg10[%c256, %c0_32] : memref<288x324xf32, #tpu.memory_space<vmem>>, vector<32x324xf32>
    tpu.vector_store %arg10[%c256, %c0_32], %77 {strides = array<i32>} : memref<288x324xf32, #tpu.memory_space<vmem>>, vector<32x324xf32>,
    %c0_33 = arith.constant 0 : index
    %c0_34 = arith.constant 0 : index
    %79 = vector.load %arg5[%c0_33, %c0_34] : memref<32x288xf32, #tpu.memory_space<vmem>>, vector<32x288xf32>
    %c0_35 = arith.constant 0 : index
    %c0_36 = arith.constant 0 : index
    %80 = vector.load %arg10[%c0_35, %c0_36] : memref<288x324xf32, #tpu.memory_space<vmem>>, vector<288x324xf32>
    %cst_37 = arith.constant dense<0.000000e+00> : vector<32x324xf32>
    %81 = tpu.matmul %79, %80, %cst_37 {dimension_numbers = #tpu.dot_dimension_numbers<[1], [0], [0], [1], [0, 0, 1, 1], [], []>} : vector<32x288xf32>, vector<288x324xf32>, vector<32x324xf32> -> vector<32x324xf32>
    %c0_38 = arith.constant 0 : index
    %c0_39 = arith.constant 0 : index
    %82 = vector.load %arg6[%c0_38, %c0_39] : memref<32x1xf32, #tpu.memory_space<vmem>>, vector<32x1xf32>
    %83 = vector.broadcast %82 : vector<32x1xf32> to vector<32x324xf32>
    %84 = arith.addf %81, %83 : vector<32x324xf32>
    %cst_40 = arith.constant 0.000000e+00 : f32
    %85 = vector.broadcast %cst_40 : f32 to vector<32x324xf32>
    %86 = arith.maximumf %84, %85 : vector<32x324xf32>
    %87 = vector.broadcast %0 : vector<1x324xf32> to vector<32x324xf32>
    %88 = arith.mulf %86, %87 : vector<32x324xf32>
    %89 = vector.extract_strided_slice %88 {offsets = [0, 305], sizes = [32, 19], strides = [1, 1]} : vector<32x324xf32> to vector<32x19xf32>
    %90 = vector.extract_strided_slice %88 {offsets = [0, 0], sizes = [32, 305], strides = [1, 1]} : vector<32x324xf32> to vector<32x305xf32>
    %91 = tpu.concatenate %89, %90 in 1 : vector<32x19xf32>, vector<32x305xf32> -> vector<32x324xf32>
    %c0_41 = arith.constant 0 : index
    %c0_42 = arith.constant 0 : index
    %92 = vector.load %arg10[%c0_41, %c0_42] : memref<288x324xf32, #tpu.memory_space<vmem>>, vector<32x324xf32>
    tpu.vector_store %arg10[%c0_41, %c0_42], %91 {strides = array<i32>} : memref<288x324xf32, #tpu.memory_space<vmem>>, vector<32x324xf32>,
    %93 = vector.extract_strided_slice %88 {offsets = [0, 306], sizes = [32, 18], strides = [1, 1]} : vector<32x324xf32> to vector<32x18xf32>
    %94 = vector.extract_strided_slice %88 {offsets = [0, 0], sizes = [32, 306], strides = [1, 1]} : vector<32x324xf32> to vector<32x306xf32>
    %95 = tpu.concatenate %93, %94 in 1 : vector<32x18xf32>, vector<32x306xf32> -> vector<32x324xf32>
    %c32_43 = arith.constant 32 : index
    %c0_44 = arith.constant 0 : index
    %96 = vector.load %arg10[%c32_43, %c0_44] : memref<288x324xf32, #tpu.memory_space<vmem>>, vector<32x324xf32>
    tpu.vector_store %arg10[%c32_43, %c0_44], %95 {strides = array<i32>} : memref<288x324xf32, #tpu.memory_space<vmem>>, vector<32x324xf32>,
    %97 = vector.extract_strided_slice %88 {offsets = [0, 307], sizes = [32, 17], strides = [1, 1]} : vector<32x324xf32> to vector<32x17xf32>
    %98 = vector.extract_strided_slice %88 {offsets = [0, 0], sizes = [32, 307], strides = [1, 1]} : vector<32x324xf32> to vector<32x307xf32>
    %99 = tpu.concatenate %97, %98 in 1 : vector<32x17xf32>, vector<32x307xf32> -> vector<32x324xf32>
    %c64_45 = arith.constant 64 : index
    %c0_46 = arith.constant 0 : index
    %100 = vector.load %arg10[%c64_45, %c0_46] : memref<288x324xf32, #tpu.memory_space<vmem>>, vector<32x324xf32>
    tpu.vector_store %arg10[%c64_45, %c0_46], %99 {strides = array<i32>} : memref<288x324xf32, #tpu.memory_space<vmem>>, vector<32x324xf32>,
    %101 = vector.extract_strided_slice %88 {offsets = [0, 323], sizes = [32, 1], strides = [1, 1]} : vector<32x324xf32> to vector<32x1xf32>
    %102 = vector.extract_strided_slice %88 {offsets = [0, 0], sizes = [32, 323], strides = [1, 1]} : vector<32x324xf32> to vector<32x323xf32>
    %103 = tpu.concatenate %101, %102 in 1 : vector<32x1xf32>, vector<32x323xf32> -> vector<32x324xf32>
    %c96_47 = arith.constant 96 : index
    %c0_48 = arith.constant 0 : index
    %104 = vector.load %arg10[%c96_47, %c0_48] : memref<288x324xf32, #tpu.memory_space<vmem>>, vector<32x324xf32>
    tpu.vector_store %arg10[%c96_47, %c0_48], %103 {strides = array<i32>} : memref<288x324xf32, #tpu.memory_space<vmem>>, vector<32x324xf32>,
    %c128_49 = arith.constant 128 : index
    %c0_50 = arith.constant 0 : index
    %105 = vector.load %arg10[%c128_49, %c0_50] : memref<288x324xf32, #tpu.memory_space<vmem>>, vector<32x324xf32>
    tpu.vector_store %arg10[%c128_49, %c0_50], %88 {strides = array<i32>} : memref<288x324xf32, #tpu.memory_space<vmem>>, vector<32x324xf32>,
    %106 = vector.extract_strided_slice %88 {offsets = [0, 1], sizes = [32, 323], strides = [1, 1]} : vector<32x324xf32> to vector<32x323xf32>
    %107 = vector.extract_strided_slice %88 {offsets = [0, 0], sizes = [32, 1], strides = [1, 1]} : vector<32x324xf32> to vector<32x1xf32>
    %108 = tpu.concatenate %106, %107 in 1 : vector<32x323xf32>, vector<32x1xf32> -> vector<32x324xf32>
    %c160_51 = arith.constant 160 : index
    %c0_52 = arith.constant 0 : index
    %109 = vector.load %arg10[%c160_51, %c0_52] : memref<288x324xf32, #tpu.memory_space<vmem>>, vector<32x324xf32>
    tpu.vector_store %arg10[%c160_51, %c0_52], %108 {strides = array<i32>} : memref<288x324xf32, #tpu.memory_space<vmem>>, vector<32x324xf32>,
    %110 = vector.extract_strided_slice %88 {offsets = [0, 17], sizes = [32, 307], strides = [1, 1]} : vector<32x324xf32> to vector<32x307xf32>
    %111 = vector.extract_strided_slice %88 {offsets = [0, 0], sizes = [32, 17], strides = [1, 1]} : vector<32x324xf32> to vector<32x17xf32>
    %112 = tpu.concatenate %110, %111 in 1 : vector<32x307xf32>, vector<32x17xf32> -> vector<32x324xf32>
    %c192_53 = arith.constant 192 : index
    %c0_54 = arith.constant 0 : index
    %113 = vector.load %arg10[%c192_53, %c0_54] : memref<288x324xf32, #tpu.memory_space<vmem>>, vector<32x324xf32>
    tpu.vector_store %arg10[%c192_53, %c0_54], %112 {strides = array<i32>} : memref<288x324xf32, #tpu.memory_space<vmem>>, vector<32x324xf32>,
    %114 = vector.extract_strided_slice %88 {offsets = [0, 18], sizes = [32, 306], strides = [1, 1]} : vector<32x324xf32> to vector<32x306xf32>
    %115 = vector.extract_strided_slice %88 {offsets = [0, 0], sizes = [32, 18], strides = [1, 1]} : vector<32x324xf32> to vector<32x18xf32>
    %116 = tpu.concatenate %114, %115 in 1 : vector<32x306xf32>, vector<32x18xf32> -> vector<32x324xf32>
    %c224_55 = arith.constant 224 : index
    %c0_56 = arith.constant 0 : index
    %117 = vector.load %arg10[%c224_55, %c0_56] : memref<288x324xf32, #tpu.memory_space<vmem>>, vector<32x324xf32>
    tpu.vector_store %arg10[%c224_55, %c0_56], %116 {strides = array<i32>} : memref<288x324xf32, #tpu.memory_space<vmem>>, vector<32x324xf32>,
    %118 = vector.extract_strided_slice %88 {offsets = [0, 19], sizes = [32, 305], strides = [1, 1]} : vector<32x324xf32> to vector<32x305xf32>
    %119 = vector.extract_strided_slice %88 {offsets = [0, 0], sizes = [32, 19], strides = [1, 1]} : vector<32x324xf32> to vector<32x19xf32>
    %120 = tpu.concatenate %118, %119 in 1 : vector<32x305xf32>, vector<32x19xf32> -> vector<32x324xf32>
    %c256_57 = arith.constant 256 : index
    %c0_58 = arith.constant 0 : index
    %121 = vector.load %arg10[%c256_57, %c0_58] : memref<288x324xf32, #tpu.memory_space<vmem>>, vector<32x324xf32>
    tpu.vector_store %arg10[%c256_57, %c0_58], %120 {strides = array<i32>} : memref<288x324xf32, #tpu.memory_space<vmem>>, vector<32x324xf32>,
    %c0_59 = arith.constant 0 : index
    %c0_60 = arith.constant 0 : index
    %122 = vector.load %arg7[%c0_59, %c0_60] : memref<8x288xf32, #tpu.memory_space<vmem>>, vector<8x288xf32>
    %c0_61 = arith.constant 0 : index
    %c0_62 = arith.constant 0 : index
    %123 = vector.load %arg10[%c0_61, %c0_62] : memref<288x324xf32, #tpu.memory_space<vmem>>, vector<288x324xf32>
    %cst_63 = arith.constant dense<0.000000e+00> : vector<8x324xf32>
    %124 = tpu.matmul %122, %123, %cst_63 {dimension_numbers = #tpu.dot_dimension_numbers<[1], [0], [0], [1], [0, 0, 1, 1], [], []>} : vector<8x288xf32>, vector<288x324xf32>, vector<8x324xf32> -> vector<8x324xf32>
    %c0_64 = arith.constant 0 : index
    %c0_65 = arith.constant 0 : index
    %125 = vector.load %arg8[%c0_64, %c0_65] : memref<8x1xf32, #tpu.memory_space<vmem>>, vector<8x1xf32>
    %126 = vector.broadcast %125 : vector<8x1xf32> to vector<8x324xf32>
    %127 = arith.addf %124, %126 : vector<8x324xf32>
    %cst_66 = arith.constant 0.000000e+00 : f32
    %128 = vector.broadcast %cst_66 : f32 to vector<8x324xf32>
    %129 = arith.maximumf %127, %128 : vector<8x324xf32>
    %130 = vector.broadcast %0 : vector<1x324xf32> to vector<8x324xf32>
    %131 = arith.mulf %129, %130 : vector<8x324xf32>
    %c0_67 = arith.constant 0 : index
    %c0_68 = arith.constant 0 : index
    %c0_69 = arith.constant 0 : index
    %132 = vector.load %arg9[%c0_67, %c0_68, %c0_69] : memref<1x8x324xf32, #tpu.memory_space<vmem>>, vector<1x8x324xf32>
    %133 = vector.shape_cast %132 : vector<1x8x324xf32> to vector<8x324xf32>
    %134 = vector.shape_cast %131 : vector<8x324xf32> to vector<1x8x324xf32>
    tpu.vector_store %arg9[%c0_67, %c0_68, %c0_69], %134 {strides = array<i32>} : memref<1x8x324xf32, #tpu.memory_space<vmem>>, vector<1x8x324xf32>,
    return
  }
  func.func @transform_0(%arg0: i32) -> (i32, i32, i32) {
    %c0_i32 = arith.constant 0 : i32
    %c0_i32_0 = arith.constant 0 : i32
    %c0_i32_1 = arith.constant 0 : i32
    return %arg0, %c0_i32, %c0_i32_0 : i32, i32, i32
  }
  func.func @transform_1(%arg0: i32) -> (i32, i32) {
    %c0_i32 = arith.constant 0 : i32
    %c0_i32_0 = arith.constant 0 : i32
    %c0_i32_1 = arith.constant 0 : i32
    return %c0_i32, %c0_i32_0 : i32, i32
  }
  func.func @transform_2(%arg0: i32) -> (i32, i32) {
    %c0_i32 = arith.constant 0 : i32
    %c0_i32_0 = arith.constant 0 : i32
    %c0_i32_1 = arith.constant 0 : i32
    return %c0_i32, %c0_i32_0 : i32, i32
  }
  func.func @transform_3(%arg0: i32) -> (i32, i32) {
    %c0_i32 = arith.constant 0 : i32
    %c0_i32_0 = arith.constant 0 : i32
    %c0_i32_1 = arith.constant 0 : i32
    return %c0_i32, %c0_i32_0 : i32, i32
  }
  func.func @transform_4(%arg0: i32) -> (i32, i32) {
    %c0_i32 = arith.constant 0 : i32
    %c0_i32_0 = arith.constant 0 : i32
    %c0_i32_1 = arith.constant 0 : i32
    return %c0_i32, %c0_i32_0 : i32, i32
  }
  func.func @transform_5(%arg0: i32) -> (i32, i32) {
    %c0_i32 = arith.constant 0 : i32
    %c0_i32_0 = arith.constant 0 : i32
    %c0_i32_1 = arith.constant 0 : i32
    return %c0_i32, %c0_i32_0 : i32, i32
  }
  func.func @transform_6(%arg0: i32) -> (i32, i32) {
    %c0_i32 = arith.constant 0 : i32
    %c0_i32_0 = arith.constant 0 : i32
    %c0_i32_1 = arith.constant 0 : i32
    return %c0_i32, %c0_i32_0 : i32, i32
  }
  func.func @transform_7(%arg0: i32) -> (i32, i32) {
    %c0_i32 = arith.constant 0 : i32
    %c0_i32_0 = arith.constant 0 : i32
    %c0_i32_1 = arith.constant 0 : i32
    return %c0_i32, %c0_i32_0 : i32, i32
  }
  func.func @transform_8(%arg0: i32) -> (i32, i32, i32) {
    %c0_i32 = arith.constant 0 : i32
    %c0_i32_0 = arith.constant 0 : i32
    %c0_i32_1 = arith.constant 0 : i32
    return %arg0, %c0_i32, %c0_i32_0 : i32, i32, i32
  }
}

</mosaic_0001>

<bundles_post_ra>
// kernel: _lambda_.1
= control target key start
LH: loop header
LB: loop body
LE: loop exit
PB: predicated region body
PF: predicated region fallthrough
CT: control target
= control target key end

     0   :  { %s2800_s27 = smov 0   ;;  %s4607_s0 = inlined_call_operand.vmem [shape: f32[2,8,324], index: 0, kind: input, shape index: {}]   ;;  %s4608_s1 = inlined_call_operand.vmem [shape: f32[1,324], index: 1, kind: input, shape index: {}]   ;;  %s4609_s2 = inlined_call_operand.vmem [shape: f32[32,72], index: 2, kind: input, shape index: {}]   ;;  %s4610_s3 = inlined_call_operand.vmem [shape: f32[32,1], index: 3, kind: input, shape index: {}]   ;;  %s4611_s4 = inlined_call_operand.vmem [shape: f32[32,288], index: 4, kind: input, shape index: {}]   ;;  %s4612_s5 = inlined_call_operand.vmem [shape: f32[32,1], index: 5, kind: input, shape index: {}]   ;;  %s4613_s6 = inlined_call_operand.vmem [shape: f32[8,288], index: 6, kind: input, shape index: {}]   ;;  %s4614_s7 = inlined_call_operand.vmem [shape: f32[8,1], index: 7, kind: input, shape index: {}]   ;;  %s4615_s8 = inlined_call_operand.vmem [shape: f32[2,8,324], index: 8, kind: output, shape index: {}]  }
   0x1 LB: > { %s2665_s28 = sadd.s32 4294967295, %s2736_s27   ;;  %p2669_p0 = scmp.ge.s32.totalorder %s2736_s27, 1  ;;  %s2736_s27 = sphi %s2800_s27, %s18_s27  }
   0x2   : > { %p262_p1 = scmp.lt.s32.totalorder %s2736_s27, 3 }
   0x4   : > { %p263_p2 = pnand %p2669_p0, %p262_p1 }
   0x6   : > { %266 = sbr.rel (%p263_p2) target bundleno = 1528 (0x5f8), region = 52 }
   0xb   : > { %p296_p3 = scmp.lt.s32.totalorder %s2665_s28, 1  ;;  %s2738_s11 = smov 79   ;;  %vm331_vm0 = vcmask 556032   ;;  %vm322_vm1 = vcmask 154624   ;;  %vm342_vm2 = vcmask 146432   ;;  %vm361_vm3 = vcmask 138240  }
   0xc   : > { %s2739_s12 = smov 19   ;;  %s4635_s13 = smov 78   ;;  %vm380_vm4 = vcmask 7168   ;;  %vm408_vm5 = vcmask 547840   ;;  %vm428_vm6 = vcmask 416768   ;;  %vm459_vm7 = vcmask 891904  }
   0xd   : > { %s4714_s28 = smov (!%p296_p3, %s2665_s28), 1  ;;  %s2741_s14 = smov 18   ;;  %vm448_vm8 = vcmask 408576   ;;  %vm439_vm9 = vcmask 900096   ;;  %vm419_vm10 = vcmask 908288   ;;  %vm399_vm11 = vcmask 1039360  }
   0xe   : > { %s4616_s29 = smul.u32 24, %s4714_s28  ;;  %s2742_s15 = smov 77   ;;  %vm468_vm12 = vcmask 400384   ;;  %v473_v54 = vld [vmem:[%s4609_s2] sm:$0xff]  ;;  %vm528_vm13 = vcmask 588800   ;;  %v2754_v61 = vmov 0  }
   0xf   : > { %s2743_s16 = smov 17   ;;  %s2744_s17 = smov 1   ;;  %2727 = vset.pattern.permute.xlu2 %v2754_v61  ;;  %v504_v62 = vld [vmem:[%s4610_s3] sm:$0xff]  ;;  %2728 = vset.pattern.permute.xlu0 %v2754_v61  ;;  %vm1403_vm14 = vcmask 261120  }
  0x10   : > { %s300_s10 = scalar_lea.vmem %s4607_s0, %s4616_s29  ;;  %s2745_s18 = smov 61   ;;  %2729 = vset.pattern.permute.xlu1 %v2754_v61 }
  0x11   : > { %v309_v0 = vld [vmem:[%s300_s10 + $0x10] sm:$0xff]  ;;  %v2816_v1 = vld [vmem:[%s300_s10 + $0x8] sm:$0xff]  ;;  %v2822_v2 = vld [vmem:[%s300_s10] sm:$0xff]  ;;  %s2746_s19 = smov 127   ;;  %s4633_s20 = smov 67  }
  0x12   : > { %311 = vrot.lane.b32.xlu0 %v309_v0, %s2738_s11  ;;  %318 = vrot.lane.b32.xlu1 %v2816_v1, %s2739_s12  ;;  %s2748_s21 = smov 111   ;;  %s2749_s22 = smov 51   ;;  %392 = vst.msk [vmem:[#allocation2 + $0x70] sm:$0xff] %vm331_vm0, %v309_v0 }
  0x13   : > { %333 = vrot.lane.b32.xlu2 %v309_v0, %s4635_s13  ;;  %s2750_s23 = smov 110   ;;  %s4619_s24 = smov 109  }
  0x14   : > { %s2752_s25 = smov 50   ;;  %s4617_s26 = smov 49  }
  0x15   : > { %s4664_s10 = smov 109   ;;  %s4665_s30 = smov 49  }
  0x1a   : > { %320 = vrot.lane.b32.xlu1 %v309_v0, %s2739_s12  ;;  %316 = vrot.lane.b32.xlu0 %v2822_v2, %s2739_s12 }
  0x1b   : > { %336 = vrot.lane.b32.xlu2 %v2822_v2, %s2741_s14 }
  0x22   : > { %340 = vrot.lane.b32.xlu1 %v309_v0, %s2741_s14  ;;  %338 = vrot.lane.b32.xlu0 %v2816_v1, %s2741_s14 }
  0x23   : > { %352 = vrot.lane.b32.xlu2 %v309_v0, %s2742_s15 }
  0x2a   : > { %357 = vrot.lane.b32.xlu1 %v2816_v1, %s2743_s16  ;;  %355 = vrot.lane.b32.xlu0 %v2822_v2, %s2743_s16 }
  0x2b   : > { %359 = vrot.lane.b32.xlu2 %v309_v0, %s2743_s16 }
  0x32   : > { %374 = vrot.lane.b32.xlu1 %v2822_v2, %s2744_s17  ;;  %371 = vrot.lane.b32.xlu0 %v309_v0, %s2745_s18 }
  0x33   : > { %376 = vrot.lane.b32.xlu2 %v2816_v1, %s2744_s17 }
  0x3a   : > { %393 = vrot.lane.b32.xlu1 %v2822_v2, %s2746_s19  ;;  %378 = vrot.lane.b32.xlu0 %v309_v0, %s2744_s17 }
  0x3b   : > { %395 = vrot.lane.b32.xlu2 %v2816_v1, %s2746_s19 }
  0x42   : > { %405 = vrot.lane.b32.xlu1 %v2822_v2, %s4633_s20  ;;  %397 = vrot.lane.b32.xlu0 %v309_v0, %s2746_s19 }
  0x43   : > { %413 = vrot.lane.b32.xlu2 %v2822_v2, %s2748_s21 }
  0x4a   : > { %417 = vrot.lane.b32.xlu1 %v309_v0, %s2748_s21  ;;  %415 = vrot.lane.b32.xlu0 %v2816_v1, %s2748_s21 }
  0x4b   : > { %425 = vrot.lane.b32.xlu2 %v2822_v2, %s2749_s22 }
  0x52   : > { %435 = vrot.lane.b32.xlu1 %v2816_v1, %s2750_s23  ;;  %433 = vrot.lane.b32.xlu0 %v2822_v2, %s2750_s23 }
  0x53   : > { %437 = vrot.lane.b32.xlu2 %v309_v0, %s2750_s23 }
  0x5a   : > { %453 = vrot.lane.b32.xlu1 %v2822_v2, %s4619_s24  ;;  %445 = vrot.lane.b32.xlu0 %v2822_v2, %s2752_s25 }
  0x5b   : > { %455 = vrot.lane.b32.xlu2 %v2816_v1, %s4619_s24 }
  0x62   : > { %465 = vrot.lane.b32.xlu1 %v2822_v2, %s4617_s26  ;;  %457 = vrot.lane.b32.xlu0 %v309_v0, %s4619_s24  ;;  %v491_v0 = vld [vmem:[#allocation2 + $0x70] sm:$0xff] }
  0x63   : > { %510 = vperm.xlu2 %2727, %v504_v62  }
  0x6d   : > { %v2873_v3 = vpop.permute.xlu2 %333 }
  0x75   : > { %v2875_v4 = vpop.permute.xlu2 %336 }
  0x76   : > { %v348_v52 = vsel %vm342_vm2, %v2873_v3, %v2875_v4 }
  0x7d   : > { %v2877_v5 = vpop.permute.xlu2 %352 }
  0x84   : > { %v2879_v6 = vpop.permute.xlu0 %311  ;;  %v2881_v7 = vpop.permute.xlu1 %318 }
  0x85   : > { %v360_v11 = vpop.permute.xlu2 %359 }
  0x8c   : > { %v321_v8 = vpop.permute.xlu1 %320  ;;  %v2883_v9 = vpop.permute.xlu0 %316 }
  0x8d   : > { %v324_v10 = vsel %vm322_vm1, %v2881_v7, %v321_v8  ;;  %v2893_v15 = vpop.permute.xlu2 %376  ;;  %v328_v55 = vsel %vm322_vm1, %v2879_v6, %v2883_v9  ;;  %v323_v3 = vsel %vm322_vm1, %v2883_v9, %v2881_v7  ;;  %v506_v6 = vld [vmem:[%s4610_s3 + $0x10] sm:$0xff]  ;;  %v507_v7 = vld [vmem:[%s4610_s3 + $0x18] sm:$0xff] }
  0x8e   : > { %332 = vst.msk [vmem:[#allocation2 + $0x10] sm:$0xff] %vm331_vm0, %v324_v10  ;;  %520 = vperm.xlu1 %2729, %v506_v6   ;;  %525 = vperm.xlu2 %2727, %v507_v7   ;;  %v475_v10 = vld [vmem:[%s4609_s2 + $0x10] sm:$0xff] }
  0x94   : > { %v341_v12 = vpop.permute.xlu1 %340  ;;  %v2888_v13 = vpop.permute.xlu0 %338 }
  0x95   : > { %v344_v14 = vsel %vm342_vm2, %v2888_v13, %v341_v12  ;;  %v396_v19 = vpop.permute.xlu2 %395  ;;  %v476_v12 = vld [vmem:[%s4609_s2 + $0x18] sm:$0xff] }
  0x96   : > { %351 = vst.msk [vmem:[#allocation2 + $0x28] sm:$0xff] %vm331_vm0, %v344_v14  ;;  %v306_v14 = vld [vmem:[%s4608_s1] sm:$0x7] }
  0x9c   : > { %v2895_v16 = vpop.permute.xlu1 %357  ;;  %v2897_v17 = vpop.permute.xlu0 %355 }
  0x9d   : > { %v363_v18 = vsel %vm361_vm3, %v2895_v16, %v360_v11  ;;  %v414_v22 = vpop.permute.xlu2 %413  ;;  %v367_v50 = vsel %vm361_vm3, %v2877_v5, %v2897_v17  ;;  %v362_v60 = vsel %vm361_vm3, %v2897_v17, %v2895_v16  ;;  %v482_v9 = vld [vmem:[#allocation2 + $0x28] sm:$0xff]  ;;  %v479_v11 = vld [vmem:[#allocation2 + $0x10] sm:$0xff]  ;;  %v2987_v17 = vperm.slane %v306_v14, 0 }
  0x9e   : > { %370 = vst.msk [vmem:[#allocation2 + $0x40] sm:$0xff] %vm331_vm0, %v363_v18 }
  0x9f   : > { %4651 = vst [vmem:[#allocation3_spill] sm:$0xff] %v2987_v17 }
  0xa4   : > { %v2902_v20 = vpop.permute.xlu1 %374  ;;  %v372_v21 = vpop.permute.xlu0 %371 }
  0xa5   : > { %v426_v29 = vpop.permute.xlu2 %425  ;;  %v386_v48 = vsel %vm380_vm4, %v372_v21, %v2902_v20  ;;  %v381_v58 = vsel %vm380_vm4, %v2902_v20, %v2893_v15  ;;  %v485_v8 = vld [vmem:[#allocation2 + $0x40] sm:$0xff] }
  0xac   : > { %v394_v23 = vpop.permute.xlu1 %393  ;;  %v379_v24 = vpop.permute.xlu0 %378 }
  0xad   : > { %v382_v25 = vsel %vm380_vm4, %v2893_v15, %v379_v24  ;;  %v438_v33 = vpop.permute.xlu2 %437  ;;  %v400_v43 = vsel %vm399_vm11, %v394_v23, %v396_v19  ;;  %v2995_v23 = vperm.slane %v306_v14, 1 }
  0xae   : > { %389 = vst.msk [vmem:[#allocation2 + $0x58] sm:$0xff] %vm331_vm0, %v382_v25 }
  0xaf   : > { %4652 = vst [vmem:[#allocation4_spill] sm:$0xff] %v2995_v23 }
  0xb4   : > { %v406_v26 = vpop.permute.xlu1 %405  ;;  %v398_v27 = vpop.permute.xlu0 %397 }
  0xb5   : > { %v409_v28 = vsel %vm408_vm5, %v398_v27, %v406_v26  ;;  %v456_v36 = vpop.permute.xlu2 %455  ;;  %v401_v53 = vsel %vm399_vm11, %v396_v19, %v398_v27  ;;  %v488_v5 = vld [vmem:[#allocation2 + $0x58] sm:$0xff] }
  0xb6   : > { %412 = vst.msk [vmem:[#allocation2 + $0x88] sm:$0xff] %vm331_vm0, %v409_v28 }
  0xbc   : > { %v418_v30 = vpop.permute.xlu1 %417  ;;  %v416_v31 = vpop.permute.xlu0 %415 }
  0xbd   : > { %v429_v32 = vsel %vm428_vm6, %v418_v30, %v426_v29  ;;  %v420_v42 = vsel %vm419_vm10, %v414_v22, %v416_v31  ;;  %v421_v51 = vsel %vm419_vm10, %v416_v31, %v418_v30  ;;  %v494_v63 = vld [vmem:[#allocation2 + $0x88] sm:$0xff]  ;;  %v3009_v30 = vperm.slane %v306_v14, 2 }
  0xbe   : > { %432 = vst.msk [vmem:[#allocation2 + $0xa0] sm:$0xff] %vm331_vm0, %v429_v32 }
  0xbf   : > { %4653 = vst [vmem:[#allocation5_spill] sm:$0xff] %v3009_v30 }
  0xc4   : > { %v436_v34 = vpop.permute.xlu1 %435  ;;  %v434_v35 = vpop.permute.xlu0 %433 }
  0xc5   : > { %v440_v41 = vsel %vm439_vm9, %v434_v35, %v436_v34  ;;  %v441_v49 = vsel %vm439_vm9, %v436_v34, %v438_v33  ;;  %v497_v59 = vld [vmem:[#allocation2 + $0xa0] sm:$0xff] }
  0xcc   : > { %v454_v37 = vpop.permute.xlu1 %453  ;;  %v446_v38 = vpop.permute.xlu0 %445 }
  0xcd   : > { %v460_v39 = vsel %vm459_vm7, %v454_v37, %v456_v36  ;;  %v449_v40 = vsel %vm448_vm8, %v438_v33, %v446_v38 }
  0xce   : > { %452 = vst.msk [vmem:[#allocation2 + $0xb8] sm:$0xff] %vm331_vm0, %v449_v40  ;;  %548 = vmatpush.msra.mxu0 %v460_v39 }
  0xd0   : > { %549 = vmatpush.msra.mxu0 %v440_v41 }
  0xd2   : > { %550 = vmatpush.msra.mxu0 %v420_v42 }
  0xd4   : > { %v466_v44 = vpop.permute.xlu1 %465  ;;  %v458_v45 = vpop.permute.xlu0 %457  ;;  %551 = vmatpush.msra.mxu0 %v400_v43 }
  0xd5   : > { %v461_v46 = vsel %vm459_vm7, %v456_v36, %v458_v45  ;;  %v469_v47 = vsel %vm468_vm12, %v458_v45, %v466_v44  ;;  %v500_v57 = vld [vmem:[#allocation2 + $0xb8] sm:$0xff] }
  0xd6   : > { %472 = vst.msk [vmem:[#allocation2 + $0xd0] sm:$0xff] %vm331_vm0, %v469_v47  ;;  %552 = vmatpush.msra.mxu0 %v2822_v2  ;;  %577 = vmatpush.msra.mxu1 %v461_v46  ;;  %v474_v2 = vld [vmem:[%s4609_s2 + $0x8] sm:$0xff] }
  0xd8   : > { %553 = vmatpush.msra.mxu0 %v386_v48  ;;  %578 = vmatpush.msra.mxu1 %v441_v49 }
  0xda   : > { %554 = vmatpush.msra.mxu0 %v367_v50  ;;  %579 = vmatpush.msra.mxu1 %v421_v51 }
  0xdc   : > { %555 = vmatpush.msra.mxu0 %v348_v52  ;;  %580 = vmatpush.msra.mxu1 %v401_v53 }
  0xdd   : > { %v503_v56 = vld [vmem:[#allocation2 + $0xd0] sm:$0xff] }
  0xde   : > { %606 = vmatpush.msra.mxu2 %v503_v56  ;;  %556 = vmatpush.msra.mxu0 %v328_v55 }
  0xdf   : > { %581 = vmatpush.msra.mxu1 %v2816_v1  ;;  %2672 = vmatmul.msk.f32.vlgmr.msra.gmra.mxu0 %vm528_vm13, %v473_v54  ;;  %v343_v1 = vsel %vm342_vm2, %v2875_v4, %v2888_v13  ;;  %v505_v4 = vld [vmem:[%s4610_s3 + $0x8] sm:$0xff]  ;;  %v511_v13 = vpop.permute.xlu2 %510 }
  0xe0   : > { %607 = vmatpush.msra.mxu2 %v500_v57  ;;  %515 = vperm.xlu0 %2728, %v505_v4  }
  0xe1   : > { %582 = vmatpush.msra.mxu1 %v381_v58 }
  0xe2   : > { %608 = vmatpush.msra.mxu2 %v497_v59 }
  0xe3   : > { %583 = vmatpush.msra.mxu1 %v362_v60 }
  0xe4   : > { %609 = vmatpush.msra.mxu2 %v494_v63 }
  0xe5   : > { %584 = vmatpush.msra.mxu1 %v343_v1 }
  0xe6   : > { %610 = vmatpush.msra.mxu2 %v491_v0 }
  0xe7   : > { %585 = vmatpush.msra.mxu1 %v323_v3  ;;  %2673 = vmatmul.msk.f32.gmra.mxu0 %vm528_vm13, %v474_v2 }
  0xe8   : > { %611 = vmatpush.msra.mxu2 %v488_v5  ;;  %2676 = vmatmul.msk.f32.vlgmr.msra.gmra.mxu1 %vm528_vm13, %v473_v54  ;;  %v526_v31 = vpop.permute.xlu2 %525 }
  0xea   : > { %612 = vmatpush.msra.mxu2 %v485_v8 }
  0xec   : > { %613 = vmatpush.msra.mxu2 %v482_v9 }
  0xee   : > { %614 = vmatpush.msra.mxu2 %v479_v11 }
  0xef   : > { %2680 = vmatmul.msk.f32.vlgmr.msra.gmra.mxu2 %vm528_vm13, %v473_v54  ;;  %2674 = vmatmul.msk.f32.gmra.mxu0 %vm528_vm13, %v475_v10 }
  0xf0   : > { %2677 = vmatmul.msk.f32.gmra.mxu1 %vm528_vm13, %v474_v2 }
  0xf7   : > { %2681 = vmatmul.msk.f32.gmra.mxu2 %vm528_vm13, %v474_v2  ;;  %2675 = vmatmul.msk.f32.gmra.mxu0 %vm528_vm13, %v476_v12 }
  0xf8   : > { %2678 = vmatmul.msk.f32.gmra.mxu1 %vm528_vm13, %v475_v10 }
  0xff   : > { %2682 = vmatmul.msk.f32.gmra.mxu2 %vm528_vm13, %v475_v10 }
 0x100   : > { %2679 = vmatmul.msk.f32.gmra.mxu1 %vm528_vm13, %v476_v12  ;;  %v521_v59 = vpop.permute.xlu1 %520 }
 0x107   : > { %2683 = vmatmul.msk.f32.gmra.mxu2 %vm528_vm13, %v476_v12 }
 0x152   : > { %v516_v36 = vpop.permute.xlu0 %515 }
 0x15c   : > { %v558_v15 = vpop.f32.mrf.mxu0 }
 0x15d   : > { %v559_v16 = vadd.f32 %v558_v15, %v511_v13 }
 0x15f   : > { %v628_v18 = vmax.f32 %v559_v16, 0.0 }
 0x161   : > { %v2990_v19 = vmul.f32 %v2987_v17, %v628_v18 }
 0x163   : > { %959 = vst [vmem:[#allocation2 + $0x180] sm:$0xff] %v2990_v19  ;;  %683 = vrot.lane.b32.xlu2 %v2990_v19, %s2739_s12 }
 0x164   : > { %v561_v20 = vpop.f32.mrf.mxu0 }
 0x165   : > { %v587_v21 = vpop.f32.mrf.mxu1  ;;  %v562_v37 = vadd.f32 %v561_v20, %v516_v36 }
 0x166   : > { %v588_v22 = vadd.f32 %v587_v21, %v511_v13 }
 0x167   : > { %v631_v41 = vmax.f32 %v562_v37, 0.0 }
 0x168   : > { %v629_v24 = vmax.f32 %v588_v22, 0.0 }
 0x169   : > { %v3026_v45 = vmul.f32 %v2987_v17, %v631_v41 }
 0x16a   : > { %v2998_v25 = vmul.f32 %v2995_v23, %v629_v24 }
 0x16b   : > { %962 = vst [vmem:[#allocation2 + $0x198] sm:$0xff] %v3026_v45 }
 0x16c   : > { %960 = vst [vmem:[#allocation2 + $0x188] sm:$0xff] %v2998_v25  ;;  %757 = vrot.lane.b32.xlu1 %v2998_v25, %s2741_s14  ;;  %685 = vrot.lane.b32.xlu0 %v2998_v25, %s2739_s12  ;;  %v3005_v26 = vpop.f32.mrf.mxu0 }
 0x16d   : > { %829 = vrot.lane.b32.xlu2 %v2998_v25, %s2743_s16  ;;  %v590_v27 = vpop.f32.mrf.mxu1  ;;  %v565_v5 = vadd.f32 %v3005_v26, %v521_v59 }
 0x16e   : > { %v591_v38 = vadd.f32 %v590_v27, %v516_v36 }
 0x16f   : > { %v634_v4 = vmax.f32 %v565_v5, 0.0 }
 0x170   : > { %v632_v42 = vmax.f32 %v591_v38, 0.0 }
 0x171   : > { %v3131_v7 = vmul.f32 %v2987_v17, %v634_v4 }
 0x172   : > { %v616_v28 = vpop.f32.mrf.mxu2  ;;  %v3029_v46 = vmul.f32 %v2995_v23, %v632_v42 }
 0x173   : > { %v617_v29 = vadd.f32 %v616_v28, %v511_v13 }
 0x174   : > { %827 = vrot.lane.b32.xlu1 %v2990_v19, %s2743_s16  ;;  %755 = vrot.lane.b32.xlu0 %v2990_v19, %s2741_s14  ;;  %v567_v32 = vpop.f32.mrf.mxu0  ;;  %963 = vst [vmem:[#allocation2 + $0x1a0] sm:$0xff] %v3029_v46 }
 0x175   : > { %v630_v33 = vmax.f32 %v617_v29, 0.0  ;;  %899 = vrot.lane.b32.xlu2 %v2990_v19, %s2744_s17  ;;  %v568_v34 = vadd.f32 %v567_v32, %v526_v31  ;;  %v593_v35 = vpop.f32.mrf.mxu1 }
 0x176   : > { %v594_v60 = vadd.f32 %v593_v35, %v521_v59 }
 0x177   : > { %v3018_v39 = vmul.f32 %v3009_v30, %v630_v33  ;;  %v637_v40 = vmax.f32 %v568_v34, 0.0 }
 0x178   : > { %v635_v62 = vmax.f32 %v594_v60, 0.0 }
 0x179   : > { %961 = vst.msk [vmem:[#allocation2 + $0x190] sm:$0xff] %vm331_vm0, %v3018_v39  ;;  %v3023_v43 = vmul.f32 %v2987_v17, %v637_v40 }
 0x17a   : > { %v619_v44 = vpop.f32.mrf.mxu2  ;;  %v3091_v0 = vmul.f32 %v2995_v23, %v635_v62 }
 0x17b   : > { %968 = vst [vmem:[#allocation2 + $0x1c8] sm:$0xff] %v3023_v43  ;;  %v620_v47 = vadd.f32 %v619_v44, %v516_v36 }
 0x17c   : > { %663 = vrot.lane.b32.xlu1 %v3018_v39, %s2738_s11  ;;  %901 = vrot.lane.b32.xlu0 %v2998_v25, %s2744_s17  ;;  %966 = vst [vmem:[#allocation2 + $0x1b8] sm:$0xff] %v3091_v0 }
 0x17d   : > { %971 = vrot.lane.b32.xlu2 %v2990_v19, %s2746_s19  ;;  %v596_v48 = vpop.f32.mrf.mxu1  ;;  %v633_v49 = vmax.f32 %v620_v47, 0.0 }
 0x17e   : > { %v597_v50 = vadd.f32 %v596_v48, %v526_v31 }
 0x17f   : > { %v3041_v51 = vmul.f32 %v3009_v30, %v633_v49 }
 0x180   : > { %v638_v52 = vmax.f32 %v597_v50, 0.0 }
 0x181   : > { %964 = vst.msk [vmem:[#allocation2 + $0x1a8] sm:$0xff] %vm331_vm0, %v3041_v51 }
 0x182   : > { %v622_v53 = vpop.f32.mrf.mxu2  ;;  %v3046_v54 = vmul.f32 %v2995_v23, %v638_v52 }
 0x183   : > { %v623_v61 = vadd.f32 %v622_v53, %v521_v59 }
 0x184   : > { %969 = vst [vmem:[#allocation2 + $0x1d0] sm:$0xff] %v3046_v54  ;;  %687 = vrot.lane.b32.xlu1 %v3018_v39, %s2739_s12  ;;  %973 = vrot.lane.b32.xlu0 %v2998_v25, %s2746_s19 }
 0x185   : > { %1015 = vrot.lane.b32.xlu2 %v2990_v19, %s4633_s20  ;;  %v636_v63 = vmax.f32 %v623_v61, 0.0 }
 0x187   : > { %v3094_v1 = vmul.f32 %v3009_v30, %v636_v63 }
 0x189   : > { %967 = vst.msk [vmem:[#allocation2 + $0x1c0] sm:$0xff] %vm331_vm0, %v3094_v1 }
 0x18a   : > { %v625_v55 = vpop.f32.mrf.mxu2 }
 0x18b   : > { %v626_v56 = vadd.f32 %v625_v55, %v526_v31 }
 0x18c   : > { %887 = vrot.lane.b32.xlu1 %v3018_v39, %s2745_s18  ;;  %815 = vrot.lane.b32.xlu0 %v3018_v39, %s2742_s15 }
 0x18d   : > { %v639_v57 = vmax.f32 %v626_v56, 0.0  ;;  %743 = vrot.lane.b32.xlu2 %v3018_v39, %s4635_s13 }
 0x18f   : > { %v3062_v58 = vmul.f32 %v3009_v30, %v639_v57 }
 0x191   : > { %970 = vst.msk [vmem:[#allocation2 + $0x1d8] sm:$0xff] %vm331_vm0, %v3062_v58 }
 0x194   : > { %903 = vrot.lane.b32.xlu1 %v3018_v39, %s2744_s17  ;;  %831 = vrot.lane.b32.xlu0 %v3018_v39, %s2743_s16 }
 0x195   : > { %759 = vrot.lane.b32.xlu2 %v3018_v39, %s2741_s14 }
 0x19c   : > { %975 = vrot.lane.b32.xlu1 %v3018_v39, %s2746_s19  ;;  %691 = vrot.lane.b32.xlu0 %v3029_v46, %s2739_s12 }
 0x19d   : > { %689 = vrot.lane.b32.xlu2 %v3026_v45, %s2739_s12 }
 0x1a4   : > { %763 = vrot.lane.b32.xlu1 %v3029_v46, %s2741_s14  ;;  %761 = vrot.lane.b32.xlu0 %v3026_v45, %s2741_s14 }
 0x1a5   : > { %835 = vrot.lane.b32.xlu2 %v3029_v46, %s2743_s16 }
 0x1ac   : > { %833 = vrot.lane.b32.xlu1 %v3026_v45, %s2743_s16  ;;  %907 = vrot.lane.b32.xlu0 %v3029_v46, %s2744_s17 }
 0x1ad   : > { %905 = vrot.lane.b32.xlu2 %v3026_v45, %s2744_s17 }
 0x1b4   : > { %693 = vrot.lane.b32.xlu1 %v3041_v51, %s2739_s12  ;;  %979 = vrot.lane.b32.xlu0 %v3029_v46, %s2746_s19 }
 0x1b5   : > { %977 = vrot.lane.b32.xlu2 %v3026_v45, %s2746_s19 }
 0x1bc   : > { %817 = vrot.lane.b32.xlu1 %v3041_v51, %s2742_s15  ;;  %1017 = vrot.lane.b32.xlu0 %v3026_v45, %s4633_s20 }
 0x1bd   : > { %665 = vrot.lane.b32.xlu2 %v3041_v51, %s2738_s11  ;;  %v3111_v2 = vpop.permute.xlu2 %683 }
 0x1c4   : > { %909 = vrot.lane.b32.xlu1 %v3041_v51, %s2744_s17  ;;  %745 = vrot.lane.b32.xlu0 %v3041_v51, %s4635_s13 }
 0x1c5   : > { %765 = vrot.lane.b32.xlu2 %v3041_v51, %s2741_s14 }
 0x1c7   : > { %v3119_v3 = vpop.permute.xlu2 %829 }
 0x1cc   : > { %981 = vrot.lane.b32.xlu1 %v3041_v51, %s2746_s19  ;;  %837 = vrot.lane.b32.xlu0 %v3041_v51, %s2743_s16 }
 0x1cd   : > { %889 = vrot.lane.b32.xlu2 %v3041_v51, %s2745_s18 }
 0x1cf   : > { %v3128_v6 = vpop.permute.xlu2 %899 }
 0x1d4   : > { %769 = vrot.lane.b32.xlu1 %v3091_v0, %s2741_s14  ;;  %697 = vrot.lane.b32.xlu0 %v3091_v0, %s2739_s12 }
 0x1d5   : > { %695 = vrot.lane.b32.xlu2 %v3131_v7, %s2739_s12 }
 0x1d7   : > { %v3139_v8 = vpop.permute.xlu2 %971 }
 0x1d8   : > { %4654 = vst [vmem:[#allocation6_spill] sm:$0xff] %v3139_v8 }
 0x1dc   : > { %839 = vrot.lane.b32.xlu1 %v3131_v7, %s2743_s16  ;;  %767 = vrot.lane.b32.xlu0 %v3131_v7, %s2741_s14 }
 0x1dd   : > { %841 = vrot.lane.b32.xlu2 %v3091_v0, %s2743_s16 }
 0x1de   : > { %v3147_v9 = vpop.permute.xlu1 %757  ;;  %v3149_v10 = vpop.permute.xlu0 %685 }
 0x1df   : > { %v1016_v11 = vpop.permute.xlu2 %1015 }
 0x1e4   : > { %1019 = vrot.lane.b32.xlu1 %v3131_v7, %s4633_s20  ;;  %913 = vrot.lane.b32.xlu0 %v3091_v0, %s2744_s17 }
 0x1e5   : > { %911 = vrot.lane.b32.xlu2 %v3131_v7, %s2744_s17 }
 0x1e6   : > { %v3157_v12 = vpop.permute.xlu1 %827  ;;  %v3159_v13 = vpop.permute.xlu0 %755 }
 0x1e7   : > { %v3161_v14 = vpop.permute.xlu2 %743 }
 0x1ec   : > { %699 = vrot.lane.b32.xlu1 %v3094_v1, %s2739_s12  ;;  %985 = vrot.lane.b32.xlu0 %v3091_v0, %s2746_s19 }
 0x1ed   : > { %983 = vrot.lane.b32.xlu2 %v3131_v7, %s2746_s19 }
 0x1ee   : > { %v3169_v15 = vpop.permute.xlu1 %663  ;;  %v3171_v16 = vpop.permute.xlu0 %901 }
 0x1ef   : > { %v760_v18 = vpop.permute.xlu2 %759 }
 0x1f0   : > { %v780_v20 = vsel %vm342_vm2, %v3147_v9, %v760_v18 }
 0x1f1   : > { %805 = vst.msk [vmem:[#allocation2 + $0x70] sm:$0xff] %vm331_vm0, %v780_v20 }
 0x1f4   : > { %747 = vrot.lane.b32.xlu1 %v3094_v1, %s4635_s13  ;;  %667 = vrot.lane.b32.xlu0 %v3094_v1, %s2738_s11 }
 0x1f5   : > { %771 = vrot.lane.b32.xlu2 %v3094_v1, %s2741_s14 }
 0x1f6   : > { %v688_v21 = vpop.permute.xlu1 %687  ;;  %v3182_v22 = vpop.permute.xlu0 %973 }
 0x1f7   : > { %4655 = vst [vmem:[#allocation7_spill] sm:$0xff] %v3182_v22  ;;  %v708_v24 = vsel %vm322_vm1, %v3149_v10, %v688_v21  ;;  %v3186_v26 = vpop.permute.xlu2 %689 }
 0x1f8   : > { %733 = vst.msk [vmem:[#allocation2 + $0x10] sm:$0xff] %vm331_vm0, %v708_v24 }
 0x1fc   : > { %915 = vrot.lane.b32.xlu1 %v3094_v1, %s2744_s17  ;;  %843 = vrot.lane.b32.xlu0 %v3094_v1, %s2743_s16 }
 0x1fd   : > { %819 = vrot.lane.b32.xlu2 %v3094_v1, %s2742_s15 }
 0x1fe   : > { %v3195_v27 = vpop.permute.xlu1 %887  ;;  %v3197_v28 = vpop.permute.xlu0 %815 }
 0x1ff   : > { %v3199_v29 = vpop.permute.xlu2 %835 }
 0x204   : > { %987 = vrot.lane.b32.xlu1 %v3094_v1, %s2746_s19  ;;  %891 = vrot.lane.b32.xlu0 %v3094_v1, %s2745_s18 }
 0x205   : > { %701 = vrot.lane.b32.xlu2 %v3023_v43, %s2739_s12 }
 0x206   : > { %v904_v31 = vpop.permute.xlu1 %903  ;;  %v832_v32 = vpop.permute.xlu0 %831 }
 0x207   : > { %v924_v33 = vsel %vm380_vm4, %v3171_v16, %v904_v31  ;;  %v852_v34 = vsel %vm361_vm3, %v3119_v3, %v832_v32  ;;  %v3211_v35 = vpop.permute.xlu2 %905 }
 0x208   : > { %949 = vst.msk [vmem:[#allocation2 + $0x130] sm:$0xff] %vm331_vm0, %v924_v33 }
 0x209   : > { %877 = vst.msk [vmem:[#allocation2 + $0xd0] sm:$0xff] %vm331_vm0, %v852_v34 }
 0x20c   : > { %775 = vrot.lane.b32.xlu1 %v3046_v54, %s2741_s14  ;;  %703 = vrot.lane.b32.xlu0 %v3046_v54, %s2739_s12 }
 0x20d   : > { %847 = vrot.lane.b32.xlu2 %v3046_v54, %s2743_s16 }
 0x20e   : > { %v3221_v36 = vpop.permute.xlu1 %975  ;;  %v3223_v37 = vpop.permute.xlu0 %691 }
 0x20f   : > { %4656 = vst [vmem:[#allocation8_spill] sm:$0xff] %v3221_v36  ;;  %v1027_v38 = vsel %vm408_vm5, %v3221_v36, %v1016_v11  ;;  %v3227_v40 = vpop.permute.xlu2 %977 }
 0x210   : > { %4657 = vst [vmem:[#allocation9_spill] sm:$0xff] %v3227_v40 }
 0x211   : > { %1033 = vst.msk [vmem:[#allocation2 + $0x1f0] sm:$0xff] %vm331_vm0, %v1027_v38 }
 0x214   : > { %845 = vrot.lane.b32.xlu1 %v3023_v43, %s2743_s16  ;;  %773 = vrot.lane.b32.xlu0 %v3023_v43, %s2741_s14 }
 0x215   : > { %917 = vrot.lane.b32.xlu2 %v3023_v43, %s2744_s17 }
 0x216   : > { %v3236_v41 = vpop.permute.xlu1 %763  ;;  %v3238_v42 = vpop.permute.xlu0 %761 }
 0x217   : > { %v3240_v44 = vpop.permute.xlu2 %665 }
 0x21c   : > { %669 = vrot.lane.b32.xlu1 %v3062_v58, %s2738_s11  ;;  %919 = vrot.lane.b32.xlu0 %v3046_v54, %s2744_s17 }
 0x21d   : > { %989 = vrot.lane.b32.xlu2 %v3023_v43, %s2746_s19 }
 0x21e   : > { %v3248_v47 = vpop.permute.xlu1 %833  ;;  %v3250_v48 = vpop.permute.xlu0 %907 }
 0x21f   : > { %v766_v49 = vpop.permute.xlu2 %765 }
 0x220   : > { %v782_v50 = vsel %vm342_vm2, %v3236_v41, %v766_v49 }
 0x221   : > { %808 = vst.msk [vmem:[#allocation2 + $0x88] sm:$0xff] %vm331_vm0, %v782_v50 }
 0x224   : > { %705 = vrot.lane.b32.xlu1 %v3062_v58, %s2739_s12  ;;  %991 = vrot.lane.b32.xlu0 %v3046_v54, %s2746_s19 }
 0x225   : > { %1021 = vrot.lane.b32.xlu2 %v3023_v43, %s4633_s20 }
 0x226   : > { %v694_v52 = vpop.permute.xlu1 %693  ;;  %v3261_v53 = vpop.permute.xlu0 %979 }
 0x227   : > { %4658 = vst [vmem:[#allocation10_spill] sm:$0xff] %v3261_v53  ;;  %v710_v55 = vsel %vm322_vm1, %v3223_v37, %v694_v52  ;;  %v3265_v56 = vpop.permute.xlu2 %889 }
 0x228   : > { %736 = vst.msk [vmem:[#allocation2 + $0x28] sm:$0xff] %vm331_vm0, %v710_v55 }
 0x22c   : > { %893 = vrot.lane.b32.xlu1 %v3062_v58, %s2745_s18  ;;  %821 = vrot.lane.b32.xlu0 %v3062_v58, %s2742_s15 }
 0x22d   : > { %749 = vrot.lane.b32.xlu2 %v3062_v58, %s4635_s13 }
 0x22e   : > { %v3274_v57 = vpop.permute.xlu1 %817  ;;  %v1018_v59 = vpop.permute.xlu0 %1017 }
 0x22f   : > { %v3276_v60 = vpop.permute.xlu2 %695 }
 0x234   : > { %921 = vrot.lane.b32.xlu1 %v3062_v58, %s2744_s17  ;;  %849 = vrot.lane.b32.xlu0 %v3062_v58, %s2743_s16 }
 0x235   : > { %777 = vrot.lane.b32.xlu2 %v3062_v58, %s2741_s14 }
 0x236   : > { %v910_v61 = vpop.permute.xlu1 %909  ;;  %v3284_v62 = vpop.permute.xlu0 %745 }
 0x237   : > { %v926_v63 = vsel %vm380_vm4, %v3250_v48, %v910_v61  ;;  %v3288_v5 = vpop.permute.xlu2 %841 }
 0x238   : > { %952 = vst.msk [vmem:[#allocation2 + $0x148] sm:$0xff] %vm331_vm0, %v926_v63 }
 0x23c   : > { %993 = vrot.lane.b32.xlu1 %v3062_v58, %s2746_s19  ;;  %1043 = vrot.lane.b32.xlu0 %v2990_v19, %s2748_s21 }
 0x23d   : > { %1047 = vrot.lane.b32.xlu2 %v3018_v39, %s2748_s21 }
 0x23e   : > { %v3297_v4 = vpop.permute.xlu1 %981  ;;  %v838_v11 = vpop.permute.xlu0 %837 }
 0x23f   : > { %4659 = vst [vmem:[#allocation11_spill] sm:$0xff] %v3297_v4  ;;  %v1028_v18 = vsel %vm408_vm5, %v3297_v4, %v1018_v59  ;;  %v854_v20 = vsel %vm361_vm3, %v3199_v29, %v838_v11  ;;  %v3303_v21 = vpop.permute.xlu2 %911 }
 0x240   : > { %1036 = vst.msk [vmem:[#allocation2 + $0x208] sm:$0xff] %vm331_vm0, %v1028_v18 }
 0x241   : > { %880 = vst.msk [vmem:[#allocation2 + $0xe8] sm:$0xff] %vm331_vm0, %v854_v20 }
 0x244   : > { %1045 = vrot.lane.b32.xlu1 %v2998_v25, %s2748_s21  ;;  %1049 = vrot.lane.b32.xlu0 %v3026_v45, %s2748_s21 }
 0x245   : > { %1053 = vrot.lane.b32.xlu2 %v3041_v51, %s2748_s21 }
 0x246   : > { %v3313_v24 = vpop.permute.xlu1 %769  ;;  %v3315_v31 = vpop.permute.xlu0 %697 }
 0x247   : > { %v3317_v32 = vpop.permute.xlu2 %983 }
 0x248   : > { %4660 = vst [vmem:[#allocation12_spill] sm:$0xff] %v3317_v32 }
 0x24c   : > { %1051 = vrot.lane.b32.xlu1 %v3029_v46, %s2748_s21  ;;  %1055 = vrot.lane.b32.xlu0 %v3131_v7, %s2748_s21 }
 0x24d   : > { %1059 = vrot.lane.b32.xlu2 %v3094_v1, %s2748_s21 }
 0x24e   : > { %v3325_v33 = vpop.permute.xlu1 %839  ;;  %v3327_v34 = vpop.permute.xlu0 %767 }
 0x24f   : > { %v772_v38 = vpop.permute.xlu2 %771 }
 0x250   : > { %v784_v49 = vsel %vm342_vm2, %v3313_v24, %v772_v38 }
 0x251   : > { %811 = vst.msk [vmem:[#allocation2 + $0xa0] sm:$0xff] %vm331_vm0, %v784_v49 }
 0x254   : > { %1057 = vrot.lane.b32.xlu1 %v3091_v0, %s2748_s21  ;;  %1061 = vrot.lane.b32.xlu0 %v3023_v43, %s2748_s21 }
 0x255   : > { %1065 = vrot.lane.b32.xlu2 %v3062_v58, %s2748_s21 }
 0x256   : > { %v1020_v50 = vpop.permute.xlu1 %1019  ;;  %v914_v52 = vpop.permute.xlu0 %913 }
 0x257   : > { %v3338_v55 = vpop.permute.xlu2 %819 }
 0x25c   : > { %1063 = vrot.lane.b32.xlu1 %v3046_v54, %s2748_s21  ;;  %1087 = vrot.lane.b32.xlu0 %v2990_v19, %s2749_s22 }
 0x25d   : > { %1091 = vrot.lane.b32.xlu2 %v3131_v7, %s2749_s22 }
 0x25e   : > { %v700_v59 = vpop.permute.xlu1 %699  ;;  %v3346_v61 = vpop.permute.xlu0 %985 }
 0x25f   : > { %4661 = vst [vmem:[#allocation13_spill] sm:$0xff] %v3346_v61  ;;  %v712_v63 = vsel %vm322_vm1, %v3315_v31, %v700_v59  ;;  %v3350_v11 = vpop.permute.xlu2 %701  ;;  %v927_v61 = vsel %vm380_vm4, %v3303_v21, %v914_v52 }
 0x260   : > { %739 = vst.msk [vmem:[#allocation2 + $0x40] sm:$0xff] %vm331_vm0, %v712_v63 }
 0x264   : > { %1089 = vrot.lane.b32.xlu1 %v3026_v45, %s2749_s22  ;;  %1093 = vrot.lane.b32.xlu0 %v3023_v43, %s2749_s22 }
 0x265   : > { %1117 = vrot.lane.b32.xlu2 %v2998_v25, %s2750_s23 }
 0x266   : > { %v3359_v18 = vpop.permute.xlu1 %747  ;;  %v3361_v20 = vpop.permute.xlu0 %667 }
 0x267   : > { %v3363_v38 = vpop.permute.xlu2 %847 }
 0x26c   : > { %1115 = vrot.lane.b32.xlu1 %v2990_v19, %s2750_s23  ;;  %1119 = vrot.lane.b32.xlu0 %v3018_v39, %s2750_s23 }
 0x26d   : > { %1133 = vrot.lane.b32.xlu2 %v3023_v43, %s2750_s23 }
 0x26e   : > { %v916_v49 = vpop.permute.xlu1 %915  ;;  %v844_v59 = vpop.permute.xlu0 %843 }
 0x26f   : > { %v928_v63 = vsel %vm380_vm4, %v914_v52, %v916_v49  ;;  %v856_v30 = vsel %vm361_vm3, %v3288_v5, %v844_v59  ;;  %v918_v23 = vpop.permute.xlu2 %917 }
 0x270   : > { %955 = vst.msk [vmem:[#allocation2 + $0x160] sm:$0xff] %vm331_vm0, %v928_v63 }
 0x271   : > { %883 = vst.msk [vmem:[#allocation2 + $0x100] sm:$0xff] %vm331_vm0, %v856_v30 }
 0x274   : > { %1121 = vrot.lane.b32.xlu1 %v3026_v45, %s2750_s23  ;;  %1135 = vrot.lane.b32.xlu0 %v3046_v54, %s2750_s23 }
 0x275   : > { %1129 = vrot.lane.b32.xlu2 %v3091_v0, %s2750_s23 }
 0x276   : > { %v3382_v17 = vpop.permute.xlu1 %987  ;;  %v892_v49 = vpop.permute.xlu0 %891 }
 0x277   : > { %4662 = vst [vmem:[#allocation14_spill] sm:$0xff] %v3382_v17  ;;  %v1029_v59 = vsel %vm408_vm5, %v3382_v17, %v1020_v50  ;;  %v3386_v36 = vpop.permute.xlu2 %989 }
 0x278   : > { %4663 = vst [vmem:[#allocation15_spill] sm:$0xff] %v3386_v36  ;;  %v925_v36 = vsel %vm380_vm4, %v3211_v35, %v3250_v48 }
 0x279   : > { %1039 = vst.msk [vmem:[#allocation2 + $0x220] sm:$0xff] %vm331_vm0, %v1029_v59 }
 0x27c   : > { %1127 = vrot.lane.b32.xlu1 %v3131_v7, %s2750_s23  ;;  %1123 = vrot.lane.b32.xlu0 %v3029_v46, %s2750_s23 }
 0x27d   : > { %1131 = vrot.lane.b32.xlu2 %v3094_v1, %s2750_s23 }
 0x27e   : > { %v776_v30 = vpop.permute.xlu1 %775  ;;  %v3395_v63 = vpop.permute.xlu0 %703 }
 0x27f   : > { %v3397_v4 = vpop.permute.xlu2 %1021 }
 0x284   : > { %1137 = vrot.lane.b32.xlu1 %v3062_v58, %s2750_s23  ;;  %1125 = vrot.lane.b32.xlu0 %v3041_v51, %s2750_s23 }
 0x285   : > { %1161 = vrot.lane.b32.xlu2 %v3026_v45, %s2752_s25 }
 0x286   : > { %v3405_v50 = vpop.permute.xlu1 %845  ;;  %v3407_v59 = vpop.permute.xlu0 %773 }
 0x287   : > { %v3409_v17 = vpop.permute.xlu2 %749 }
 0x28c   : > { %1159 = vrot.lane.b32.xlu1 %v2990_v19, %s2752_s25  ;;  %1205 = vrot.lane.b32.xlu0 %v3023_v43, %s4664_s10 }
 0x28d   : > { %1199 = vrot.lane.b32.xlu2 %v3131_v7, %s4664_s10 }
 0x28e   : > { %v3417_v8 = vpop.permute.xlu1 %669  ;;  %v920_v22 = vpop.permute.xlu0 %919 }
 0x28f   : > { %v929_v40 = vsel %vm380_vm4, %v918_v23, %v920_v22  ;;  %v778_v53 = vpop.permute.xlu2 %777 }
 0x290   : > { %v786_v32 = vsel %vm342_vm2, %v776_v30, %v778_v53  ;;  %1503 = vmatpush.msrb.mxu2 %v929_v40  ;;  %v923_v40 = vsel %vm380_vm4, %v3128_v6, %v3171_v16  ;;  %v853_v16 = vsel %vm361_vm3, %v3248_v47, %v3199_v29  ;;  %v785_v29 = vsel %vm342_vm2, %v3407_v59, %v776_v30 }
 0x291   : > { %814 = vst.msk [vmem:[#allocation2 + $0xb8] sm:$0xff] %vm331_vm0, %v786_v32 }
 0x292   : > { %1504 = vmatpush.msrb.mxu2 %v927_v61 }
 0x294   : > { %1207 = vrot.lane.b32.xlu1 %v3046_v54, %s4664_s10  ;;  %1201 = vrot.lane.b32.xlu0 %v3091_v0, %s4664_s10  ;;  %v857_v54 = vsel %vm361_vm3, %v3405_v50, %v3363_v38  ;;  %v855_v0 = vsel %vm361_vm3, %v3325_v33, %v3288_v5 }
 0x295   : > { %1193 = vrot.lane.b32.xlu2 %v3026_v45, %s4664_s10  ;;  %1505 = vmatpush.msrb.mxu2 %v925_v36  ;;  %v851_v36 = vsel %vm361_vm3, %v3157_v12, %v3119_v3  ;;  %v781_v3 = vsel %vm342_vm2, %v3238_v42, %v3236_v41 }
 0x296   : > { %v706_v53 = vpop.permute.xlu1 %705  ;;  %v3436_v32 = vpop.permute.xlu0 %991 }
 0x297   : > { %v714_v48 = vsel %vm322_vm1, %v3395_v63, %v706_v53  ;;  %v3440_v52 = vpop.permute.xlu2 %1047  ;;  %1506 = vmatpush.msrb.mxu2 %v923_v40 }
 0x298   : > { %742 = vst.msk [vmem:[#allocation2 + $0x58] sm:$0xff] %vm331_vm0, %v714_v48  ;;  %v783_v48 = vsel %vm342_vm2, %v3327_v34, %v3313_v24 }
 0x299   : > { %1507 = vmatpush.msrb.mxu2 %v857_v54 }
 0x29b   : > { %1508 = vmatpush.msrb.mxu2 %v855_v0 }
 0x29c   : > { %1165 = vrot.lane.b32.xlu1 %v3023_v43, %s2752_s25  ;;  %1195 = vrot.lane.b32.xlu0 %v3029_v46, %s4664_s10  ;;  %v945_v46 = vsel %vm380_vm4, %v892_v49, %v3303_v21  ;;  %v943_v21 = vsel %vm380_vm4, %v3195_v27, %v3128_v6  ;;  %v713_v6 = vsel %vm322_vm1, %v3350_v11, %v3395_v63 }
 0x29d   : > { %1187 = vrot.lane.b32.xlu2 %v2990_v19, %s4664_s10  ;;  %1509 = vmatpush.msrb.mxu2 %v853_v16  ;;  %v872_v27 = vsel %vm361_vm3, %v3274_v57, %v3248_v47 }
 0x29e   : > { %v894_v5 = vpop.permute.xlu1 %893  ;;  %v822_v61 = vpop.permute.xlu0 %821 }
 0x29f   : > { %v946_v40 = vsel %vm380_vm4, %v894_v5, %v918_v23  ;;  %v3462_v53 = vpop.permute.xlu2 %1053  ;;  %1510 = vmatpush.msrb.mxu2 %v851_v36  ;;  %v944_v23 = vsel %vm380_vm4, %v3265_v56, %v3211_v35  ;;  %v779_v56 = vsel %vm342_vm2, %v3159_v13, %v3147_v9  ;;  %v873_v9 = vsel %vm361_vm3, %v3338_v55, %v3325_v33 }
 0x2a0   : > { %1416 = vmatpush.msra.mxu3 %v946_v40  ;;  %v709_v33 = vsel %vm322_vm1, %v3186_v26, %v3223_v37  ;;  %v707_v37 = vsel %vm322_vm1, %v3111_v2, %v3149_v10 }
 0x2a1   : > { %1511 = vmatpush.msrb.mxu2 %v785_v29 }
 0x2a2   : > { %1417 = vmatpush.msra.mxu3 %v945_v46 }
 0x2a3   : > { %1512 = vmatpush.msrb.mxu2 %v783_v48 }
 0x2a4   : > { %1163 = vrot.lane.b32.xlu1 %v3131_v7, %s2752_s25  ;;  %1189 = vrot.lane.b32.xlu0 %v2998_v25, %s4664_s10 }
 0x2a5   : > { %1203 = vrot.lane.b32.xlu2 %v3094_v1, %s4664_s10  ;;  %1418 = vmatpush.msra.mxu3 %v944_v23  ;;  %v874_v1 = vsel %vm361_vm3, %v822_v61, %v3405_v50 }
 0x2a6   : > { %v922_v24 = vpop.permute.xlu1 %921  ;;  %v850_v35 = vpop.permute.xlu0 %849  ;;  %1513 = vmatpush.msrb.mxu2 %v781_v3 }
 0x2a7   : > { %v930_v25 = vsel %vm380_vm4, %v920_v22, %v922_v24  ;;  %v858_v41 = vsel %vm361_vm3, %v3363_v38, %v850_v35  ;;  %v3492_v49 = vpop.permute.xlu2 %1059  ;;  %1419 = vmatpush.msra.mxu3 %v943_v21  ;;  %v711_v22 = vsel %vm322_vm1, %v3276_v60, %v3315_v31  ;;  %v3594_v38 = vld [vmem:[%s4611_s4 + $0x30] sm:$0xff] }
 0x2a8   : > { %958 = vst.msk [vmem:[#allocation2 + $0x178] sm:$0xff] %vm331_vm0, %v930_v25  ;;  %1514 = vmatpush.msrb.mxu2 %v779_v56 }
 0x2a9   : > { %886 = vst.msk [vmem:[#allocation2 + $0x118] sm:$0xff] %vm331_vm0, %v858_v41  ;;  %1420 = vmatpush.msra.mxu3 %v874_v1 }
 0x2aa   : > { %1515 = vmatpush.msrb.mxu2 %v713_v6 }
 0x2ab   : > { %1421 = vmatpush.msra.mxu3 %v873_v9 }
 0x2ac   : > { %1209 = vrot.lane.b32.xlu1 %v3062_v58, %s4664_s10  ;;  %1197 = vrot.lane.b32.xlu0 %v3041_v51, %s4664_s10  ;;  %v871_v51 = vsel %vm361_vm3, %v3197_v28, %v3157_v12  ;;  %v802_v12 = vsel %vm342_vm2, %v3409_v17, %v3407_v59  ;;  %v801_v28 = vsel %vm342_vm2, %v3359_v18, %v3327_v34  ;;  %v1381_v18 = vld [vmem:[%s4612_s5 + $0x10] sm:$0xff] }
 0x2ad   : > { %1237 = vrot.lane.b32.xlu2 %v3023_v43, %s4665_s30  ;;  %1516 = vmatpush.msrb.mxu2 %v711_v22  ;;  %v3534_v43 = vld [vmem:[%s4611_s4] sm:$0xff]  ;;  %v800_v17 = vsel %vm342_vm2, %v3284_v62, %v3238_v42  ;;  %v730_v62 = vsel %vm322_vm1, %v3417_v8, %v3350_v11  ;;  %v728_v8 = vsel %vm322_vm1, %v3240_v44, %v3186_v26  ;;  %v1382_v26 = vld [vmem:[%s4612_s5 + $0x18] sm:$0xff] }
 0x2ae   : > { %v3519_v55 = vpop.permute.xlu1 %993  ;;  %v3521_v31 = vpop.permute.xlu0 %1043  ;;  %1422 = vmatpush.msra.mxu3 %v872_v27  ;;  %v1379_v42 = vld [vmem:[%s4612_s5] sm:$0xff] }
 0x2af   : > { %v1030_v58 = vsel %vm408_vm5, %v3519_v55, %v3397_v4  ;;  %v3529_v47 = vpop.permute.xlu2 %1065  ;;  %1517 = vmatpush.msrb.mxu2 %v709_v33 }
 0x2b0   : > { %1042 = vst.msk [vmem:[#allocation2 + $0x238] sm:$0xff] %vm331_vm0, %v1030_v58  ;;  %1423 = vmatpush.msra.mxu3 %v871_v51 }
 0x2b1   : > { %1518 = vmatpush.msrb.mxu2 %v707_v37 }
 0x2b2   : > { %1519 = vmatmul.f32.vlgmr.msrb.gmra.mxu2 %v3534_v43  ;;  %1424 = vmatpush.msra.mxu3 %v802_v12 }
 0x2b4   : > { %1191 = vrot.lane.b32.xlu1 %v3018_v39, %s4664_s10  ;;  %1235 = vrot.lane.b32.xlu0 %v3131_v7, %s4665_s30  ;;  %v3563_v39 = vld [vmem:[%s4611_s4 + $0x18] sm:$0xff] }
 0x2b5   : > { %1231 = vrot.lane.b32.xlu2 %v2990_v19, %s4665_s30  ;;  %1425 = vmatpush.msra.mxu3 %v801_v28  ;;  %v799_v19 = vsel %vm342_vm2, %v3161_v14, %v3159_v13  ;;  %v729_v13 = vsel %vm322_vm1, %v3361_v20, %v3276_v60  ;;  %v1380_v20 = vld [vmem:[%s4612_s5 + $0x8] sm:$0xff]  ;;  %v4666_v28 = vld [vmem:[#allocation15_spill] sm:$0xff] }
 0x2b6   : > { %v3556_v10 = vpop.permute.xlu1 %1045  ;;  %v3558_v57 = vpop.permute.xlu0 %1049 }
 0x2b7   : > { %v1092_v4 = vpop.permute.xlu2 %1091  ;;  %1426 = vmatpush.msra.mxu3 %v800_v17  ;;  %v1067_v37 = vsel %vm419_vm10, %v3521_v31, %v3556_v10  ;;  %v1001_v17 = vsel %vm399_vm11, %v4666_v28, %v3436_v32 }
 0x2b8   : > { %v1101_v34 = vsel %vm428_vm6, %v3492_v49, %v1092_v4 }
 0x2b9   : > { %1111 = vst.msk [vmem:[#allocation2 + $0x280] sm:$0xff] %vm331_vm0, %v1101_v34  ;;  %1427 = vmatpush.msra.mxu3 %v799_v19 }
 0x2ba   : > { %1522 = vmatmul.f32.gmra.mxu2 %v3563_v39 }
 0x2bb   : > { %1428 = vmatpush.msra.mxu3 %v730_v62  ;;  %v4668_v62 = vld [vmem:[#allocation12_spill] sm:$0xff] }
 0x2bc   : > { %1233 = vrot.lane.b32.xlu1 %v3026_v45, %s4665_s30  ;;  %1385 = vperm.xlu0 %2728, %v1379_v42   ;;  %v727_v45 = vsel %vm322_vm1, %v3169_v15, %v3111_v2  ;;  %v3614_v15 = vld [vmem:[%s4611_s4 + $0x48] sm:$0xff]  ;;  %v4667_v42 = vld [vmem:[#allocation13_spill] sm:$0xff] }
 0x2bd   : > { %1395 = vperm.xlu2 %2727, %v1381_v18   ;;  %1429 = vmatpush.msra.mxu3 %v729_v13  ;;  %v999_v31 = vsel %vm399_vm11, %v4668_v62, %v4667_v42 }
 0x2be   : > { %v3589_v14 = vpop.permute.xlu1 %1051  ;;  %v1056_v11 = vpop.permute.xlu0 %1055 }
 0x2bf   : > { %1430 = vmatpush.msra.mxu3 %v728_v8  ;;  %v3599_v60 = vpop.permute.xlu2 %1117  ;;  %v1069_v51 = vsel %vm419_vm10, %v3558_v57, %v3589_v14  ;;  %v4669_v8 = vld [vmem:[#allocation10_spill] sm:$0xff] }
 0x2c1   : > { %1431 = vmatpush.msra.mxu3 %v727_v45 }
 0x2c2   : > { %1432 = vmatmul.f32.vlgmr.msra.gmra.mxu3 %v3534_v43  ;;  %1525 = vmatmul.f32.gmra.mxu2 %v3594_v38 }
 0x2c4   : > { %1390 = vperm.xlu1 %2729, %v1380_v20   ;;  %1400 = vperm.xlu0 %2728, %v1382_v26   ;;  %v4671_v20 = vld [vmem:[#allocation7_spill] sm:$0xff]  ;;  %v4672_v26 = vld [vmem:[#allocation6_spill] sm:$0xff] }
 0x2c6   : > { %v3609_v44 = vpop.permute.xlu1 %1057  ;;  %v1062_v2 = vpop.permute.xlu0 %1061 }
 0x2c7   : > { %v1134_v30 = vpop.permute.xlu2 %1133  ;;  %v1071_v22 = vsel %vm419_vm10, %v1056_v11, %v3609_v44  ;;  %v4670_v11 = vld [vmem:[#allocation9_spill] sm:$0xff] }
 0x2c8   : > { %v997_v45 = vsel %vm399_vm11, %v4670_v11, %v4669_v8 }
 0x2ca   : > { %1435 = vmatmul.f32.gmra.mxu3 %v3563_v39  ;;  %1528 = vmatmul.f32.gmra.mxu2 %v3614_v15 }
 0x2ce   : > { %v1064_v63 = vpop.permute.xlu1 %1063  ;;  %v1088_v50 = vpop.permute.xlu0 %1087 }
 0x2cf   : > { %v1099_v59 = vsel %vm428_vm6, %v3440_v52, %v1088_v50  ;;  %v1130_v54 = vpop.permute.xlu2 %1129  ;;  %v1073_v1 = vsel %vm419_vm10, %v1062_v2, %v1064_v63  ;;  %v1074_v18 = vsel %vm419_vm10, %v1064_v63, %v3529_v47  ;;  %v1070_v2 = vsel %vm419_vm10, %v3589_v14, %v3462_v53  ;;  %v1328_v63 = vld [vmem:[#allocation2 + $0x1c8] sm:$0xff]  ;;  %v4673_v14 = vld [vmem:[#allocation14_spill] sm:$0xff] }
 0x2d0   : > { %1105 = vst.msk [vmem:[#allocation2 + $0x250] sm:$0xff] %vm331_vm0, %v1099_v59 }
 0x2d2   : > { %1438 = vmatmul.f32.gmra.mxu3 %v3594_v38 }
 0x2d6   : > { %v1090_v0 = vpop.permute.xlu1 %1089  ;;  %v1094_v16 = vpop.permute.xlu0 %1093 }
 0x2d7   : > { %v1100_v36 = vsel %vm428_vm6, %v3462_v53, %v1090_v0  ;;  %v1102_v5 = vsel %vm428_vm6, %v3529_v47, %v1094_v16  ;;  %v3629_v29 = vpop.permute.xlu2 %1131  ;;  %v995_v47 = vsel %vm399_vm11, %v4672_v26, %v4671_v20  ;;  %v1002_v53 = vsel %vm399_vm11, %v3436_v32, %v3519_v55  ;;  %v3699_v0 = vld [vmem:[%s4611_s4 + $0x8] sm:$0xff]  ;;  %v1319_v32 = vld [vmem:[#allocation2 + $0x180] sm:$0xff] }
 0x2d8   : > { %1108 = vst.msk [vmem:[#allocation2 + $0x268] sm:$0xff] %vm331_vm0, %v1100_v36  ;;  %v1144_v58 = vsel %vm439_vm9, %v1130_v54, %v3629_v29  ;;  %v4675_v16 = vld [vmem:[#allocation8_spill] sm:$0xff] }
 0x2d9   : > { %1114 = vst.msk [vmem:[#allocation2 + $0x298] sm:$0xff] %vm331_vm0, %v1102_v5  ;;  %v996_v36 = vsel %vm399_vm11, %v4671_v20, %v4675_v16  ;;  %v1300_v20 = vld [vmem:[#allocation2 + $0xe8] sm:$0xff] }
 0x2da   : > { %1441 = vmatmul.f32.gmra.mxu3 %v3614_v15  ;;  %v1336_v16 = vld [vmem:[#allocation2 + $0x208] sm:$0xff] }
 0x2de   : > { %v1116_v61 = vpop.permute.xlu1 %1115  ;;  %v1120_v40 = vpop.permute.xlu0 %1119 }
 0x2df   : > { %v1162_v3 = vpop.permute.xlu2 %1161  ;;  %v1139_v25 = vsel %vm439_vm9, %v1116_v61, %v3599_v60  ;;  %v1140_v57 = vsel %vm439_vm9, %v3599_v60, %v1120_v40  ;;  %v1072_v60 = vsel %vm419_vm10, %v3609_v44, %v3492_v49 }
 0x2e0   : > { %v1354_v11 = vld [vmem:[#allocation2 + $0x298] sm:$0xff] }
 0x2e6   : > { %v1122_v46 = vpop.permute.xlu1 %1121  ;;  %v1136_v48 = vpop.permute.xlu0 %1135 }
 0x2e7   : > { %v1145_v23 = vsel %vm439_vm9, %v1134_v30, %v1136_v48  ;;  %v1200_v41 = vpop.permute.xlu2 %1199  ;;  %v1068_v30 = vsel %vm419_vm10, %v3556_v10, %v3440_v52  ;;  %v1322_v10 = vld [vmem:[#allocation2 + $0x198] sm:$0xff] }
 0x2e8   : > { %1445 = vmatpush.msrb.mxu0 %v1145_v23 }
 0x2ee   : > { %v1128_v21 = vpop.permute.xlu1 %1127  ;;  %v1124_v24 = vpop.permute.xlu0 %1123 }
 0x2ef   : > { %v1143_v35 = vsel %vm439_vm9, %v1128_v21, %v1130_v54  ;;  %v1141_v56 = vsel %vm439_vm9, %v1122_v46, %v1124_v24  ;;  %v1194_v4 = vpop.permute.xlu2 %1193  ;;  %v1000_v54 = vsel %vm399_vm11, %v4667_v42, %v4673_v14  ;;  %v3717_v21 = vld [vmem:[%s4611_s4 + $0x20] sm:$0xff]  ;;  %v1306_v42 = vld [vmem:[#allocation2 + $0x118] sm:$0xff] }
 0x2f0   : > { %1446 = vmatpush.msrb.mxu0 %v1143_v35 }
 0x2f2   : > { %1447 = vmatpush.msrb.mxu0 %v1141_v56 }
 0x2f4   : > { %1448 = vmatpush.msrb.mxu0 %v1139_v25  ;;  %v1320_v25 = vld [vmem:[#allocation2 + $0x188] sm:$0xff] }
 0x2f6   : > { %v3637_v6 = vpop.permute.xlu1 %1137  ;;  %v1126_v9 = vpop.permute.xlu0 %1125  ;;  %1449 = vmatpush.msrb.mxu0 %v1073_v1 }
 0x2f7   : > { %v1146_v27 = vsel %vm439_vm9, %v1136_v48, %v3637_v6  ;;  %v1172_v33 = vsel %vm448_vm8, %v1126_v9, %v1162_v3  ;;  %v1142_v12 = vsel %vm439_vm9, %v1124_v24, %v1126_v9  ;;  %v1188_v44 = vpop.permute.xlu2 %1187  ;;  %v1329_v48 = vld [vmem:[#allocation2 + $0x1d0] sm:$0xff]  ;;  %v1326_v3 = vld [vmem:[#allocation2 + $0x1b8] sm:$0xff]  ;;  %v1323_v24 = vld [vmem:[#allocation2 + $0x1a0] sm:$0xff] }
 0x2f8   : > { %1180 = vst.msk [vmem:[#allocation2 + $0x2c8] sm:$0xff] %vm331_vm0, %v1172_v33  ;;  %1450 = vmatpush.msrb.mxu0 %v1071_v22  ;;  %1532 = vmatpush.msrb.mxu3 %v1146_v27  ;;  %v3726_v9 = vld [vmem:[%s4611_s4 + $0x10] sm:$0xff]  ;;  %v3735_v22 = vld [vmem:[%s4611_s4 + $0x38] sm:$0xff]  ;;  %v1315_v33 = vld [vmem:[#allocation2 + $0x160] sm:$0xff] }
 0x2fa   : > { %1451 = vmatpush.msrb.mxu0 %v1069_v51  ;;  %1533 = vmatpush.msrb.mxu3 %v1144_v58 }
 0x2fc   : > { %1452 = vmatpush.msrb.mxu0 %v1067_v37  ;;  %1534 = vmatpush.msrb.mxu3 %v1142_v12  ;;  %v1312_v37 = vld [vmem:[#allocation2 + $0x148] sm:$0xff] }
 0x2fe   : > { %v1160_v19 = vpop.permute.xlu1 %1159  ;;  %v1206_v34 = vpop.permute.xlu0 %1205  ;;  %1453 = vmatpush.msrb.mxu0 %v1001_v17  ;;  %1535 = vmatpush.msrb.mxu3 %v1140_v57  ;;  %v3744_v57 = vld [vmem:[%s4611_s4 + $0x28] sm:$0xff] }
 0x2ff   : > { %v1171_v13 = vsel %vm448_vm8, %v1120_v40, %v1160_v19  ;;  %v3712_v23 = vpop.permute.xlu2 %1203  ;;  %v1360_v19 = vld [vmem:[#allocation2 + $0x2c8] sm:$0xff] }
 0x300   : > { %1177 = vst.msk [vmem:[#allocation2 + $0x2b0] sm:$0xff] %vm331_vm0, %v1171_v13  ;;  %1454 = vmatpush.msrb.mxu0 %v999_v31  ;;  %1536 = vmatpush.msrb.mxu3 %v1074_v18  ;;  %v3756_v31 = vld [vmem:[%s4611_s4 + $0x50] sm:$0xff]  ;;  %v1303_v13 = vld [vmem:[#allocation2 + $0x100] sm:$0xff] }
 0x302   : > { %1455 = vmatpush.msrb.mxu0 %v997_v45  ;;  %1537 = vmatpush.msrb.mxu3 %v1072_v60 }
 0x304   : > { %1456 = vmatpush.msrb.mxu0 %v995_v47  ;;  %1538 = vmatpush.msrb.mxu3 %v1070_v2 }
 0x306   : > { %v3681_v50 = vpop.permute.xlu1 %1207  ;;  %v3683_v49 = vpop.permute.xlu0 %1201  ;;  %1457 = vmatpush.msrb.mxu0 %v1328_v63  ;;  %1539 = vmatpush.msrb.mxu3 %v1068_v30  ;;  %v1351_v30 = vld [vmem:[#allocation2 + $0x280] sm:$0xff] }
 0x307   : > { %v1217_v59 = vsel %vm459_vm7, %v1206_v34, %v3681_v50  ;;  %v1215_v52 = vsel %vm459_vm7, %v1200_v41, %v3683_v49  ;;  %v1238_v27 = vpop.permute.xlu2 %1237  ;;  %v1216_v34 = vsel %vm459_vm7, %v3683_v49, %v3712_v23  ;;  %v1357_v62 = vld [vmem:[#allocation2 + $0x2b0] sm:$0xff]  ;;  %v3768_v49 = vld [vmem:[%s4611_s4 + $0x40] sm:$0xff] }
 0x308   : > { %1458 = vmatpush.msrb.mxu0 %v3131_v7  ;;  %1486 = vmatpush.msrb.mxu1 %v1217_v59  ;;  %v4674_v7 = vld [vmem:[#allocation11_spill] sm:$0xff]  ;;  %v1345_v59 = vld [vmem:[#allocation2 + $0x250] sm:$0xff] }
 0x309   : > { %1540 = vmatpush.msrb.mxu3 %v1002_v53  ;;  %v998_v55 = vsel %vm399_vm11, %v4669_v8, %v4674_v7  ;;  %v1294_v53 = vld [vmem:[#allocation2 + $0xb8] sm:$0xff]  ;;  %v1288_v7 = vld [vmem:[#allocation2 + $0x88] sm:$0xff] }
 0x30a   : > { %1459 = vmatpush.msrb.mxu0 %v1322_v10  ;;  %1487 = vmatpush.msrb.mxu1 %v1215_v52  ;;  %v1342_v52 = vld [vmem:[#allocation2 + $0x238] sm:$0xff]  ;;  %v1291_v10 = vld [vmem:[#allocation2 + $0xa0] sm:$0xff] }
 0x30b   : > { %1541 = vmatpush.msrb.mxu3 %v1000_v54 }
 0x30c   : > { %1460 = vmatpush.msrb.mxu0 %v1319_v32  ;;  %v1339_v32 = vld [vmem:[#allocation2 + $0x220] sm:$0xff] }
 0x30d   : > { %1542 = vmatpush.msrb.mxu3 %v998_v55  ;;  %1461 = vmatmul.f32.vlgmr.msrb.gmra.mxu0 %v3699_v0 }
 0x30e   : > { %v1166_v5 = vpop.permute.xlu1 %1165  ;;  %v1196_v61 = vpop.permute.xlu0 %1195 }
 0x30f   : > { %v1174_v40 = vsel %vm448_vm8, %v3637_v6, %v1166_v5  ;;  %v1213_v46 = vsel %vm459_vm7, %v1194_v4, %v1196_v61  ;;  %1543 = vmatpush.msrb.mxu3 %v996_v36  ;;  %v1309_v4 = vld [vmem:[#allocation2 + $0x130] sm:$0xff]  ;;  %v1232_v8 = vpop.permute.xlu2 %1231  ;;  %v1270_v36 = vld [vmem:[%s4611_s4 + $0x58] sm:$0xff] }
 0x310   : > { %1186 = vst.msk [vmem:[#allocation2 + $0x2f8] sm:$0xff] %vm331_vm0, %v1174_v40  ;;  %1488 = vmatpush.msrb.mxu1 %v1213_v46  ;;  %v1285_v5 = vld [vmem:[#allocation2 + $0x70] sm:$0xff]  ;;  %v1282_v40 = vld [vmem:[#allocation2 + $0x58] sm:$0xff] }
 0x311   : > { %1544 = vmatpush.msrb.mxu3 %v1329_v48  ;;  %v1330_v46 = vld [vmem:[#allocation2 + $0x1d8] sm:$0xff]  ;;  %v1279_v48 = vld [vmem:[#allocation2 + $0x40] sm:$0xff] }
 0x313   : > { %1545 = vmatpush.msrb.mxu3 %v1326_v3 }
 0x315   : > { %1546 = vmatpush.msrb.mxu3 %v1323_v24  ;;  %1464 = vmatmul.f32.gmra.mxu0 %v3717_v21  ;;  %v1276_v24 = vld [vmem:[#allocation2 + $0x28] sm:$0xff] }
 0x316   : > { %v1164_v35 = vpop.permute.xlu1 %1163  ;;  %v1190_v56 = vpop.permute.xlu0 %1189 }
 0x317   : > { %v1173_v41 = vsel %vm448_vm8, %v3629_v29, %v1164_v35  ;;  %v1211_v1 = vsel %vm459_vm7, %v1188_v44, %v1190_v56  ;;  %v1366_v6 = vld [vmem:[#allocation2 + $0x2f8] sm:$0xff]  ;;  %1547 = vmatpush.msrb.mxu3 %v1320_v25  ;;  %v1348_v44 = vld [vmem:[#allocation2 + $0x268] sm:$0xff]  ;;  %v1273_v25 = vld [vmem:[#allocation2 + $0x10] sm:$0xff] }
 0x318   : > { %1183 = vst.msk [vmem:[#allocation2 + $0x2e0] sm:$0xff] %vm331_vm0, %v1173_v41  ;;  %1619 = vmatpush.msra.mxu2 %v1366_v6  ;;  %1548 = vmatmul.f32.vlgmr.msrb.gmra.mxu3 %v3699_v0  ;;  %v1318_v29 = vld [vmem:[#allocation2 + $0x178] sm:$0xff]  ;;  %v1324_v35 = vld [vmem:[#allocation2 + $0x1a8] sm:$0xff]  ;;  %v1321_v41 = vld [vmem:[#allocation2 + $0x190] sm:$0xff] }
 0x319   : > { %1489 = vmatpush.msrb.mxu1 %v1211_v1 }
 0x31a   : > { %2684 = vmatmul.msk.f32.vlgmr.msrb.gmra.mxu1 %vm1403_vm14, %v3726_v9 }
 0x31b   : > { %1590 = vmatpush.msra.mxu1 %v1318_v29 }
 0x31d   : > { %1591 = vmatpush.msra.mxu1 %v1315_v33  ;;  %1467 = vmatmul.f32.gmra.mxu0 %v3735_v22 }
 0x31e   : > { %v1210_v51 = vpop.permute.xlu1 %1209  ;;  %v1198_v58 = vpop.permute.xlu0 %1197 }
 0x31f   : > { %v1218_v12 = vsel %vm459_vm7, %v3681_v50, %v1210_v51  ;;  %v1246_v28 = vsel %vm468_vm12, %v1210_v51, %v1238_v27  ;;  %v1363_v17 = vld [vmem:[#allocation2 + $0x2e0] sm:$0xff]  ;;  %1592 = vmatpush.msra.mxu1 %v1312_v37  ;;  %v1214_v18 = vsel %vm459_vm7, %v1196_v61, %v1198_v58  ;;  %v1297_v50 = vld [vmem:[#allocation2 + $0xd0] sm:$0xff] }
 0x320   : > { %1258 = vst.msk [vmem:[#allocation2 + $0x358] sm:$0xff] %vm331_vm0, %v1246_v28  ;;  %1620 = vmatpush.msra.mxu2 %v1363_v17  ;;  %1551 = vmatmul.f32.gmra.mxu3 %v3717_v21  ;;  %v1333_v61 = vld [vmem:[#allocation2 + $0x1f0] sm:$0xff]  ;;  %v4676_v28 = vld [vmem:[#allocation3_spill] sm:$0xff] }
 0x321   : > { %1593 = vmatpush.msra.mxu1 %v1309_v4  ;;  %1573 = vmatpush.msra.mxu0 %v1218_v12 }
 0x322   : > { %1621 = vmatpush.msra.mxu2 %v1360_v19  ;;  %2685 = vmatmul.msk.f32.gmra.mxu1 %vm1403_vm14, %v3744_v57 }
 0x323   : > { %1594 = vmatpush.msra.mxu1 %v1306_v42  ;;  %1574 = vmatpush.msra.mxu0 %v1216_v34 }
 0x324   : > { %1622 = vmatpush.msra.mxu2 %v1357_v62 }
 0x325   : > { %1595 = vmatpush.msra.mxu1 %v1303_v13  ;;  %1575 = vmatpush.msra.mxu0 %v1214_v18 }
 0x326   : > { %v1192_v45 = vpop.permute.xlu1 %1191  ;;  %v1236_v60 = vpop.permute.xlu0 %1235  ;;  %1623 = vmatpush.msra.mxu2 %v1354_v11  ;;  %1470 = vmatmul.f32.gmra.mxu0 %v3756_v31 }
 0x327   : > { %v1212_v26 = vsel %vm459_vm7, %v1190_v56, %v1192_v45  ;;  %v1243_v47 = vsel %vm468_vm12, %v1192_v45, %v1232_v8  ;;  %v1245_v2 = vsel %vm468_vm12, %v3712_v23, %v1236_v60  ;;  %v1378_v63 = vld [vmem:[#allocation2 + $0x358] sm:$0xff]  ;;  %1596 = vmatpush.msra.mxu1 %v1300_v20  ;;  %v1327_v23 = vld [vmem:[#allocation2 + $0x1c0] sm:$0xff] }
 0x328   : > { %1249 = vst.msk [vmem:[#allocation2 + $0x310] sm:$0xff] %vm331_vm0, %v1243_v47  ;;  %1624 = vmatpush.msra.mxu2 %v1351_v30  ;;  %1660 = vmatpush.msra.mxu3 %v1378_v63 }
 0x329   : > { %1255 = vst.msk [vmem:[#allocation2 + $0x340] sm:$0xff] %vm331_vm0, %v1245_v2  ;;  %1554 = vmatmul.f32.gmra.mxu3 %v3735_v22  ;;  %1597 = vmatpush.msra.mxu1 %v1297_v50 }
 0x32a   : > { %1625 = vmatpush.msra.mxu2 %v1348_v44  ;;  %1576 = vmatpush.msra.mxu0 %v1212_v26 }
 0x32b   : > { %2686 = vmatmul.msk.f32.gmra.mxu1 %vm1403_vm14, %v3768_v49 }
 0x32c   : > { %1626 = vmatpush.msra.mxu2 %v1345_v59  ;;  %1598 = vmatpush.msra.mxu1 %v1294_v53 }
 0x32e   : > { %v1234_v14 = vpop.permute.xlu1 %1233  ;;  %1627 = vmatpush.msra.mxu2 %v1342_v52  ;;  %1599 = vmatpush.msra.mxu1 %v1291_v10  ;;  %v3803_v6 = vpop.permute.xlu0 %1385 }
 0x32f   : > { %v1244_v54 = vsel %vm468_vm12, %v1198_v58, %v1234_v14  ;;  %2688 = vmatmul.msk.f32.vlgmr.msra.gmra.mxu0 %vm1403_vm14, %v3726_v9  ;;  %v1369_v56 = vld [vmem:[#allocation2 + $0x310] sm:$0xff]  ;;  %v4677_v14 = vld [vmem:[#allocation4_spill] sm:$0xff] }
 0x330   : > { %1252 = vst.msk [vmem:[#allocation2 + $0x328] sm:$0xff] %vm331_vm0, %v1244_v54  ;;  %1628 = vmatpush.msra.mxu2 %v1339_v32  ;;  %v1375_v55 = vld [vmem:[#allocation2 + $0x340] sm:$0xff]  ;;  %1600 = vmatpush.msra.mxu1 %v1288_v7 }
 0x331   : > { %1661 = vmatpush.msra.mxu3 %v1375_v55 }
 0x332   : > { %1629 = vmatpush.msra.mxu2 %v1336_v16  ;;  %1557 = vmatmul.f32.gmra.mxu3 %v3756_v31 }
 0x333   : > { %1601 = vmatpush.msra.mxu1 %v1285_v5 }
 0x334   : > { %1630 = vmatpush.msra.mxu2 %v1333_v61  ;;  %2687 = vmatmul.msk.f32.gmra.mxu1 %vm1403_vm14, %v1270_v36 }
 0x335   : > { %1602 = vmatpush.msra.mxu1 %v1282_v40 }
 0x336   : > { %1631 = vmatpush.msra.mxu2 %v1330_v46  ;;  %v3806_v37 = vpop.permute.xlu1 %1390  ;;  %v3833_v63 = vpop.permute.xlu0 %1400 }
 0x337   : > { %v1372_v3 = vld [vmem:[#allocation2 + $0x328] sm:$0xff]  ;;  %1603 = vmatpush.msra.mxu1 %v1279_v48  ;;  %2689 = vmatmul.msk.f32.gmra.mxu0 %vm1403_vm14, %v3744_v57 }
 0x338   : > { %1632 = vmatpush.msra.mxu2 %v1327_v23  ;;  %1662 = vmatpush.msra.mxu3 %v1372_v3 }
 0x339   : > { %1604 = vmatpush.msra.mxu1 %v1276_v24 }
 0x33a   : > { %1633 = vmatpush.msra.mxu2 %v1324_v35  ;;  %1663 = vmatpush.msra.mxu3 %v1369_v56 }
 0x33b   : > { %1605 = vmatpush.msra.mxu1 %v1273_v25  ;;  %2692 = vmatmul.msk.f32.vlgmr.msra.gmra.mxu3 %vm1403_vm14, %v3726_v9 }
 0x33c   : > { %1634 = vmatpush.msra.mxu2 %v1321_v41  ;;  %1606 = vmatmul.f32.vlgmr.msra.gmra.mxu1 %v3534_v43 }
 0x33d   : > { %1635 = vmatmul.f32.vlgmr.msra.gmra.mxu2 %v3699_v0 }
 0x33f   : > { %2690 = vmatmul.msk.f32.gmra.mxu0 %vm1403_vm14, %v3768_v49 }
 0x343   : > { %2693 = vmatmul.msk.f32.gmra.mxu3 %vm1403_vm14, %v3744_v57 }
 0x344   : > { %1609 = vmatmul.f32.gmra.mxu1 %v3563_v39 }
 0x345   : > { %1638 = vmatmul.f32.gmra.mxu2 %v3717_v21  ;;  %v1433_v43 = vpop.f32.mrf.mxu3 }
 0x346   : > { %v1434_v29 = vadd.f32 %v1433_v43, %v3803_v6 }
 0x347   : > { %2691 = vmatmul.msk.f32.gmra.mxu0 %vm1403_vm14, %v1270_v36 }
 0x34b   : > { %2694 = vmatmul.msk.f32.gmra.mxu3 %vm1403_vm14, %v3768_v49 }
 0x34c   : > { %1612 = vmatmul.f32.gmra.mxu1 %v3594_v38 }
 0x34d   : > { %1641 = vmatmul.f32.gmra.mxu2 %v3735_v22  ;;  %v1436_v0 = vpop.f32.mrf.mxu3  ;;  %v1520_v22 = vpop.f32.mrf.mxu2 }
 0x34e   : > { %v1437_v12 = vadd.f32 %v1436_v0, %v3806_v37  ;;  %v1521_v60 = vadd.f32 %v1520_v22, %v3803_v6 }
 0x353   : > { %2695 = vmatmul.msk.f32.gmra.mxu3 %vm1403_vm14, %v1270_v36 }
 0x354   : > { %1615 = vmatmul.f32.gmra.mxu1 %v3614_v15 }
 0x355   : > { %1644 = vmatmul.f32.gmra.mxu2 %v3756_v31  ;;  %v1439_v39 = vpop.f32.mrf.mxu3  ;;  %v3819_v31 = vpop.permute.xlu2 %1395 }
 0x356   : > { %v1523_v18 = vpop.f32.mrf.mxu2  ;;  %v1440_v8 = vadd.f32 %v1439_v39, %v3819_v31 }
 0x357   : > { %v1524_v10 = vadd.f32 %v1523_v18, %v3806_v37 }
 0x35d   : > { %v1442_v9 = vpop.f32.mrf.mxu3 }
 0x35e   : > { %v1526_v44 = vpop.f32.mrf.mxu2  ;;  %v1443_v59 = vadd.f32 %v1442_v9, %v3833_v63 }
 0x35f   : > { %v1527_v23 = vadd.f32 %v1526_v44, %v3819_v31 }
 0x366   : > { %v1529_v48 = vpop.f32.mrf.mxu2 }
 0x38a   : > { %v1462_v1 = vpop.f32.mrf.mxu0 }
 0x38b   : > { %v1463_v27 = vadd.f32 %v1462_v1, %v1434_v29  ;;  %v1530_v1 = vadd.f32 %v1529_v48, %v3833_v63 }
 0x392   : > { %v1465_v21 = vpop.f32.mrf.mxu0 }
 0x393   : > { %v1466_v57 = vadd.f32 %v1465_v21, %v1437_v12 }
 0x397   : > { %v1491_v38 = vpop.f32.mrf.mxu1 }
 0x398   : > { %v1492_v33 = vadd.f32 %v1491_v38, %v1463_v27 }
 0x39a   : > { %v1677_v51 = vmax.f32 %v1492_v33, 0.0  ;;  %v1468_v58 = vpop.f32.mrf.mxu0 }
 0x39b   : > { %v1549_v15 = vpop.f32.mrf.mxu3  ;;  %v1469_v11 = vadd.f32 %v1468_v58, %v1440_v8  ;;  %v4678_v58 = vld [vmem:[#allocation5_spill] sm:$0xff] }
 0x39c   : > { %v3810_v17 = vmul.f32 %v1677_v51, %v4676_v28  ;;  %v1550_v26 = vadd.f32 %v1549_v15, %v1521_v60 }
 0x39e   : > { %2001 = vst [vmem:[#allocation2 + $0x180] sm:$0xff] %v3810_v17  ;;  %1869 = vrot.lane.b32.xlu1 %v3810_v17, %s2743_s16  ;;  %1797 = vrot.lane.b32.xlu0 %v3810_v17, %s2741_s14 }
 0x39f   : > { %1725 = vrot.lane.b32.xlu2 %v3810_v17, %s2739_s12  ;;  %v1494_v4 = vpop.f32.mrf.mxu1 }
 0x3a0   : > { %v1495_v19 = vadd.f32 %v1494_v4, %v1466_v57 }
 0x3a2   : > { %v1680_v34 = vmax.f32 %v1495_v19, 0.0 }
 0x3a3   : > { %v1471_v42 = vpop.f32.mrf.mxu0  ;;  %v1552_v62 = vpop.f32.mrf.mxu3 }
 0x3a4   : > { %v3822_v13 = vmul.f32 %v1680_v34, %v4676_v28  ;;  %v1472_v52 = vadd.f32 %v1471_v42, %v1443_v59  ;;  %v1553_v55 = vadd.f32 %v1552_v62, %v1524_v10 }
 0x3a6   : > { %2004 = vst [vmem:[#allocation2 + $0x198] sm:$0xff] %v3822_v13  ;;  %2085 = vrot.lane.b32.xlu1 %v3810_v17, %s2748_s21  ;;  %1803 = vrot.lane.b32.xlu0 %v3822_v13, %s2741_s14 }
 0x3a7   : > { %1941 = vrot.lane.b32.xlu2 %v3810_v17, %s2744_s17 }
 0x3a8   : > { %v1497_v45 = vpop.f32.mrf.mxu1 }
 0x3a9   : > { %v1498_v20 = vadd.f32 %v1497_v45, %v1469_v11 }
 0x3ab   : > { %v1683_v47 = vmax.f32 %v1498_v20, 0.0 }
 0x3ac   : > { %v1555_v2 = vpop.f32.mrf.mxu3  ;;  %v1578_v30 = vpop.f32.mrf.mxu0 }
 0x3ad   : > { %v3836_v50 = vmul.f32 %v1683_v47, %v4676_v28  ;;  %v1579_v49 = vadd.f32 %v1578_v30, %v1550_v26  ;;  %v1556_v35 = vadd.f32 %v1555_v2, %v1527_v23 }
 0x3ae   : > { %2201 = vrot.lane.b32.xlu1 %v3810_v17, %s2752_s25  ;;  %2091 = vrot.lane.b32.xlu0 %v3822_v13, %s2748_s21 }
 0x3af   : > { %2007 = vst [vmem:[#allocation2 + $0x1b0] sm:$0xff] %v3836_v50  ;;  %v1678_v53 = vmax.f32 %v1579_v49, 0.0  ;;  %2157 = vrot.lane.b32.xlu2 %v3810_v17, %s2750_s23 }
 0x3b1   : > { %v3848_v54 = vmul.f32 %v1678_v53, %v4677_v14  ;;  %v1500_v32 = vpop.f32.mrf.mxu1 }
 0x3b2   : > { %v1501_v7 = vadd.f32 %v1500_v32, %v1472_v52 }
 0x3b3   : > { %2002 = vst [vmem:[#allocation2 + $0x188] sm:$0xff] %v3848_v54 }
 0x3b4   : > { %v1686_v16 = vmax.f32 %v1501_v7, 0.0  ;;  %v1581_v36 = vpop.f32.mrf.mxu0 }
 0x3b5   : > { %v1582_v5 = vadd.f32 %v1581_v36, %v1553_v55  ;;  %v1558_v40 = vpop.f32.mrf.mxu3 }
 0x3b6   : > { %v3852_v61 = vmul.f32 %v1686_v16, %v4676_v28  ;;  %1875 = vrot.lane.b32.xlu1 %v3822_v13, %s2743_s16  ;;  %2203 = vrot.lane.b32.xlu0 %v3822_v13, %s2752_s25  ;;  %v1559_v27 = vadd.f32 %v1558_v40, %v1530_v1 }
 0x3b7   : > { %v1681_v46 = vmax.f32 %v1582_v5, 0.0  ;;  %1731 = vrot.lane.b32.xlu2 %v3822_v13, %s2739_s12 }
 0x3b8   : > { %2010 = vst [vmem:[#allocation2 + $0x1c8] sm:$0xff] %v3852_v61 }
 0x3b9   : > { %v3863_v3 = vmul.f32 %v1681_v46, %v4677_v14  ;;  %v1607_v24 = vpop.f32.mrf.mxu1 }
 0x3ba   : > { %v1608_v43 = vadd.f32 %v1607_v24, %v3803_v6 }
 0x3bb   : > { %2005 = vst [vmem:[#allocation2 + $0x1a0] sm:$0xff] %v3863_v3 }
 0x3bc   : > { %v1584_v56 = vpop.f32.mrf.mxu0 }
 0x3bd   : > { %v1585_v25 = vadd.f32 %v1584_v56, %v1556_v35 }
 0x3be   : > { %v1665_v41 = vpop.f32.mrf.mxu3  ;;  %1947 = vrot.lane.b32.xlu1 %v3822_v13, %s2744_s17  ;;  %1809 = vrot.lane.b32.xlu0 %v3836_v50, %s2741_s14 }
 0x3bf   : > { %v1684_v0 = vmax.f32 %v1585_v25, 0.0  ;;  %2163 = vrot.lane.b32.xlu2 %v3822_v13, %s2750_s23 }
 0x3c0   : > { %v1636_v39 = vpop.f32.mrf.mxu2 }
 0x3c1   : > { %v1637_v21 = vadd.f32 %v1636_v39, %v1608_v43  ;;  %v3875_v9 = vmul.f32 %v1684_v0, %v4677_v14  ;;  %v1610_v29 = vpop.f32.mrf.mxu1 }
 0x3c2   : > { %v1611_v12 = vadd.f32 %v1610_v29, %v3806_v37 }
 0x3c3   : > { %2008 = vst [vmem:[#allocation2 + $0x1b8] sm:$0xff] %v3875_v9  ;;  %v1666_v38 = vadd.f32 %v1665_v41, %v1637_v21 }
 0x3c4   : > { %v1587_v33 = vpop.f32.mrf.mxu0 }
 0x3c5   : > { %v1679_v22 = vmax.f32 %v1666_v38, 0.0  ;;  %v1588_v51 = vadd.f32 %v1587_v33, %v1559_v27 }
 0x3c6   : > { %v1668_v6 = vpop.f32.mrf.mxu3  ;;  %1881 = vrot.lane.b32.xlu1 %v3836_v50, %s2743_s16  ;;  %1815 = vrot.lane.b32.xlu0 %v3852_v61, %s2741_s14 }
 0x3c7   : > { %v3883_v15 = vmul.f32 %v1679_v22, %v4678_v58  ;;  %v1687_v57 = vmax.f32 %v1588_v51, 0.0  ;;  %1737 = vrot.lane.b32.xlu2 %v3836_v50, %s2739_s12 }
 0x3c8   : > { %v1639_v4 = vpop.f32.mrf.mxu2 }
 0x3c9   : > { %2003 = vst.msk [vmem:[#allocation2 + $0x190] sm:$0xff] %vm331_vm0, %v3883_v15  ;;  %v1640_v19 = vadd.f32 %v1639_v4, %v1611_v12  ;;  %v3891_v34 = vmul.f32 %v1687_v57, %v4677_v14  ;;  %v1613_v42 = vpop.f32.mrf.mxu1 }
 0x3ca   : > { %v1614_v11 = vadd.f32 %v1613_v42, %v3819_v31 }
 0x3cb   : > { %2011 = vst [vmem:[#allocation2 + $0x1d0] sm:$0xff] %v3891_v34  ;;  %v1669_v62 = vadd.f32 %v1668_v6, %v1640_v19 }
 0x3cd   : > { %v1682_v18 = vmax.f32 %v1669_v62, 0.0 }
 0x3ce   : > { %v1671_v8 = vpop.f32.mrf.mxu3  ;;  %1887 = vrot.lane.b32.xlu1 %v3852_v61, %s2743_s16  ;;  %1959 = vrot.lane.b32.xlu0 %v3852_v61, %s2744_s17 }
 0x3cf   : > { %v3899_v37 = vmul.f32 %v1682_v18, %v4678_v58  ;;  %1953 = vrot.lane.b32.xlu2 %v3836_v50, %s2744_s17 }
 0x3d0   : > { %v1642_v45 = vpop.f32.mrf.mxu2 }
 0x3d1   : > { %2006 = vst.msk [vmem:[#allocation2 + $0x1a8] sm:$0xff] %vm331_vm0, %v3899_v37  ;;  %v1643_v60 = vadd.f32 %v1642_v45, %v1614_v11  ;;  %v1616_v26 = vpop.f32.mrf.mxu1 }
 0x3d2   : > { %v1617_v31 = vadd.f32 %v1616_v26, %v3833_v63 }
 0x3d3   : > { %v1672_v20 = vadd.f32 %v1671_v8, %v1643_v60 }
 0x3d5   : > { %v1685_v47 = vmax.f32 %v1672_v20, 0.0 }
 0x3d6   : > { %2103 = vrot.lane.b32.xlu1 %v3852_v61, %s2748_s21  ;;  %1727 = vrot.lane.b32.xlu0 %v3848_v54, %s2739_s12  ;;  %v1674_v49 = vpop.f32.mrf.mxu3 }
 0x3d7   : > { %v3911_v2 = vmul.f32 %v1685_v47, %v4678_v58  ;;  %2169 = vrot.lane.b32.xlu2 %v3836_v50, %s2750_s23 }
 0x3d8   : > { %v1645_v30 = vpop.f32.mrf.mxu2 }
 0x3d9   : > { %2009 = vst.msk [vmem:[#allocation2 + $0x1c0] sm:$0xff] %vm331_vm0, %v3911_v2  ;;  %v1646_v44 = vadd.f32 %v1645_v30, %v1617_v31 }
 0x3db   : > { %v1675_v59 = vadd.f32 %v1674_v49, %v1646_v44 }
 0x3dd   : > { %v1688_v53 = vmax.f32 %v1675_v59, 0.0 }
 0x3de   : > { %2207 = vrot.lane.b32.xlu1 %v3852_v61, %s2752_s25  ;;  %1943 = vrot.lane.b32.xlu0 %v3848_v54, %s2744_s17 }
 0x3df   : > { %v3923_v52 = vmul.f32 %v1688_v53, %v4678_v58  ;;  %2097 = vrot.lane.b32.xlu2 %v3836_v50, %s2748_s21 }
 0x3e1   : > { %2012 = vst.msk [vmem:[#allocation2 + $0x1d8] sm:$0xff] %vm331_vm0, %v3923_v52 }
 0x3e6   : > { %1799 = vrot.lane.b32.xlu1 %v3848_v54, %s2741_s14  ;;  %2159 = vrot.lane.b32.xlu0 %v3848_v54, %s2750_s23 }
 0x3e7   : > { %2205 = vrot.lane.b32.xlu2 %v3836_v50, %s2752_s25  ;;  %s4684_s25 = smov 78  }
 0x3ee   : > { %1805 = vrot.lane.b32.xlu1 %v3863_v3, %s2741_s14  ;;  %1733 = vrot.lane.b32.xlu0 %v3863_v3, %s2739_s12 }
 0x3ef   : > { %1743 = vrot.lane.b32.xlu2 %v3852_v61, %s2739_s12 }
 0x3f6   : > { %2093 = vrot.lane.b32.xlu1 %v3863_v3, %s2748_s21  ;;  %2165 = vrot.lane.b32.xlu0 %v3863_v3, %s2750_s23 }
 0x3f7   : > { %2175 = vrot.lane.b32.xlu2 %v3852_v61, %s2750_s23 }
 0x3f9   : > { %v3947_v63 = vpop.permute.xlu2 %1725 }
 0x3fe   : > { %1811 = vrot.lane.b32.xlu1 %v3875_v9, %s2741_s14  ;;  %1739 = vrot.lane.b32.xlu0 %v3875_v9, %s2739_s12 }
 0x3ff   : > { %2031 = vrot.lane.b32.xlu2 %v3852_v61, %s2746_s19 }
 0x401   : > { %v3955_v10 = vpop.permute.xlu2 %1941 }
 0x406   : > { %1817 = vrot.lane.b32.xlu1 %v3891_v34, %s2741_s14  ;;  %1955 = vrot.lane.b32.xlu0 %v3875_v9, %s2744_s17 }
 0x407   : > { %2135 = vrot.lane.b32.xlu2 %v3852_v61, %s2749_s22 }
 0x409   : > { %v3963_v32 = vpop.permute.xlu2 %2157 }
 0x40e   : > { %1961 = vrot.lane.b32.xlu1 %v3891_v34, %s2744_s17  ;;  %2171 = vrot.lane.b32.xlu0 %v3875_v9, %s2750_s23 }
 0x40f   : > { %1871 = vrot.lane.b32.xlu2 %v3848_v54, %s2743_s16 }
 0x410   : > { %v3971_v7 = vpop.permute.xlu1 %1869  ;;  %v3973_v55 = vpop.permute.xlu0 %1797 }
 0x411   : > { %v3975_v16 = vpop.permute.xlu2 %1731 }
 0x416   : > { %1705 = vrot.lane.b32.xlu1 %v3883_v15, %s2738_s11  ;;  %2099 = vrot.lane.b32.xlu0 %v3875_v9, %s2748_s21 }
 0x417   : > { %2087 = vrot.lane.b32.xlu2 %v3848_v54, %s2748_s21 }
 0x418   : > { %v3983_v36 = vpop.permute.xlu1 %2085  ;;  %v3985_v5 = vpop.permute.xlu0 %1803 }
 0x419   : > { %v3987_v40 = vpop.permute.xlu2 %2163 }
 0x41e   : > { %1729 = vrot.lane.b32.xlu1 %v3883_v15, %s2739_s12  ;;  %1745 = vrot.lane.b32.xlu0 %v3891_v34, %s2739_s12 }
 0x41f   : > { %1877 = vrot.lane.b32.xlu2 %v3863_v3, %s2743_s16 }
 0x420   : > { %v3995_v46 = vpop.permute.xlu1 %2201  ;;  %v2092_v48 = vpop.permute.xlu0 %2091 }
 0x421   : > { %v3997_v23 = vpop.permute.xlu2 %1737 }
 0x422   : > { %4679 = vst [vmem:[#allocation15_spill] sm:$0xff] %v3997_v23 }
 0x426   : > { %1929 = vrot.lane.b32.xlu1 %v3883_v15, %s2745_s18  ;;  %2177 = vrot.lane.b32.xlu0 %v3891_v34, %s2750_s23 }
 0x427   : > { %1949 = vrot.lane.b32.xlu2 %v3863_v3, %s2744_s17 }
 0x428   : > { %v4005_v24 = vpop.permute.xlu1 %1875  ;;  %v4007_v35 = vpop.permute.xlu0 %2203 }
 0x429   : > { %v4009_v56 = vpop.permute.xlu2 %1953 }
 0x42a   : > { %4680 = vst [vmem:[#allocation13_spill] sm:$0xff] %v4009_v56 }
 0x42e   : > { %1945 = vrot.lane.b32.xlu1 %v3883_v15, %s2744_s17  ;;  %2033 = vrot.lane.b32.xlu0 %v3891_v34, %s2746_s19 }
 0x42f   : > { %1883 = vrot.lane.b32.xlu2 %v3875_v9, %s2743_s16 }
 0x430   : > { %v4017_v25 = vpop.permute.xlu1 %1947  ;;  %v4019_v41 = vpop.permute.xlu0 %1809 }
 0x431   : > { %v4021_v43 = vpop.permute.xlu2 %2169 }
 0x436   : > { %1735 = vrot.lane.b32.xlu1 %v3899_v37, %s2739_s12  ;;  %1857 = vrot.lane.b32.xlu0 %v3883_v15, %s2742_s15 }
 0x437   : > { %1889 = vrot.lane.b32.xlu2 %v3891_v34, %s2743_s16 }
 0x438   : > { %v4029_v0 = vpop.permute.xlu1 %1881  ;;  %v4031_v39 = vpop.permute.xlu0 %1815 }
 0x439   : > { %4681 = vst [vmem:[#allocation12_spill] sm:$0xff] %v4031_v39  ;;  %v4033_v1 = vpop.permute.xlu2 %2097 }
 0x43e   : > { %1859 = vrot.lane.b32.xlu1 %v3899_v37, %s2742_s15  ;;  %1873 = vrot.lane.b32.xlu0 %v3883_v15, %s2743_s16 }
 0x43f   : > { %2105 = vrot.lane.b32.xlu2 %v3891_v34, %s2748_s21 }
 0x440   : > { %v4041_v21 = vpop.permute.xlu1 %1887  ;;  %v4043_v29 = vpop.permute.xlu0 %1959 }
 0x441   : > { %4682 = vst [vmem:[#allocation10_spill] sm:$0xff] %v4043_v29  ;;  %v4045_v27 = vpop.permute.xlu2 %2205 }
 0x442   : > { %4683 = vst [vmem:[#allocation9_spill] sm:$0xff] %v4045_v27 }
 0x446   : > { %1951 = vrot.lane.b32.xlu1 %v3899_v37, %s2744_s17  ;;  %2161 = vrot.lane.b32.xlu0 %v3883_v15, %s2750_s23 }
 0x447   : > { %1785 = vrot.lane.b32.xlu2 %v3883_v15, %s4684_s25 }
 0x448   : > { %v4053_v38 = vpop.permute.xlu1 %2103  ;;  %v4055_v33 = vpop.permute.xlu0 %1727 }
 0x449   : > { %v4060_v22 = vsel %vm322_vm1, %v3947_v63, %v4055_v33  ;;  %v4062_v51 = vpop.permute.xlu2 %1743 }
 0x44e   : > { %1741 = vrot.lane.b32.xlu1 %v3911_v2, %s2739_s12  ;;  %1787 = vrot.lane.b32.xlu0 %v3899_v37, %s4684_s25 }
 0x44f   : > { %1801 = vrot.lane.b32.xlu2 %v3883_v15, %s2741_s14 }
 0x450   : > { %v4070_v6 = vpop.permute.xlu1 %2207  ;;  %v4072_v12 = vpop.permute.xlu0 %1943 }
 0x451   : > { %4685 = vst [vmem:[#allocation7_spill] sm:$0xff] %v4070_v6  ;;  %v4077_v57 = vsel %vm380_vm4, %v3955_v10, %v4072_v12  ;;  %v4079_v4 = vpop.permute.xlu2 %2175 }
 0x456   : > { %1789 = vrot.lane.b32.xlu1 %v3911_v2, %s4684_s25  ;;  %1879 = vrot.lane.b32.xlu0 %v3899_v37, %s2743_s16 }
 0x457   : > { %1707 = vrot.lane.b32.xlu2 %v3899_v37, %s2738_s11 }
 0x458   : > { %v4087_v19 = vpop.permute.xlu1 %1799  ;;  %v4089_v42 = vpop.permute.xlu0 %2159 }
 0x459   : > { %v4094_v62 = vsel %vm342_vm2, %v3973_v55, %v4087_v19  ;;  %v4099_v18 = vsel %vm439_vm9, %v3963_v32, %v4089_v42  ;;  %v4101_v8 = vpop.permute.xlu2 %2031 }
 0x45e   : > { %1957 = vrot.lane.b32.xlu1 %v3911_v2, %s2744_s17  ;;  %1709 = vrot.lane.b32.xlu0 %v3911_v2, %s2738_s11 }
 0x45f   : > { %1807 = vrot.lane.b32.xlu2 %v3899_v37, %s2741_s14 }
 0x460   : > { %v4109_v11 = vpop.permute.xlu1 %1805  ;;  %v4111_v45 = vpop.permute.xlu0 %1733 }
 0x461   : > { %v4116_v60 = vsel %vm342_vm2, %v3985_v5, %v4109_v11  ;;  %v4121_v20 = vsel %vm322_vm1, %v3975_v16, %v4111_v45  ;;  %v4123_v26 = vpop.permute.xlu2 %2135 }
 0x462   : > { %4686 = vst [vmem:[#allocation6_spill] sm:$0xff] %v4123_v26 }
 0x466   : > { %2173 = vrot.lane.b32.xlu1 %v3911_v2, %s2750_s23  ;;  %1885 = vrot.lane.b32.xlu0 %v3911_v2, %s2743_s16 }
 0x467   : > { %1931 = vrot.lane.b32.xlu2 %v3899_v37, %s2745_s18 }
 0x468   : > { %v4131_v47 = vpop.permute.xlu1 %2093  ;;  %v4133_v31 = vpop.permute.xlu0 %2165 }
 0x469   : > { %4687 = vst [vmem:[#allocation14_spill] sm:$0xff] %v4131_v47  ;;  %v4137_v30 = vsel %vm419_vm10, %v2092_v48, %v4131_v47  ;;  %v4142_v49 = vsel %vm439_vm9, %v3987_v40, %v4133_v31  ;;  %v4144_v44 = vpop.permute.xlu2 %1871 }
 0x46a   : > { %v1893_v59 = vsel %vm361_vm3, %v3971_v7, %v4144_v44 }
 0x46e   : > { %1711 = vrot.lane.b32.xlu1 %v3923_v52, %s2738_s11  ;;  %1933 = vrot.lane.b32.xlu0 %v3911_v2, %s2745_s18 }
 0x46f   : > { %2167 = vrot.lane.b32.xlu2 %v3899_v37, %s2750_s23 }
 0x470   : > { %v4155_v53 = vpop.permute.xlu1 %1811  ;;  %v4157_v32 = vpop.permute.xlu0 %1739 }
 0x471   : > { %4688 = vst [vmem:[#allocation11_spill] sm:$0xff] %v4155_v53  ;;  %v1825_v40 = vsel %vm342_vm2, %v4019_v41, %v4155_v53  ;;  %v4165_v48 = vsel %vm322_vm1, %v3997_v23, %v4157_v32  ;;  %v4167_v58 = vpop.permute.xlu2 %2087 }
 0x472   : > { %4689 = vst [vmem:[#allocation8_spill] sm:$0xff] %v4167_v58  ;;  %v4172_v14 = vsel %vm419_vm10, %v3983_v36, %v4167_v58 }
 0x476   : > { %1747 = vrot.lane.b32.xlu1 %v3923_v52, %s2739_s12  ;;  %1863 = vrot.lane.b32.xlu0 %v3923_v52, %s2742_s15 }
 0x477   : > { %1813 = vrot.lane.b32.xlu2 %v3911_v2, %s2741_s14 }
 0x478   : > { %v4180_v28 = vpop.permute.xlu1 %1817  ;;  %v4182_v47 = vpop.permute.xlu0 %1955 }
 0x479   : > { %4690 = vst [vmem:[#allocation16_spill] sm:$0xff] %v4180_v28  ;;  %v1827_v26 = vsel %vm342_vm2, %v4031_v39, %v4180_v28  ;;  %v1969_v36 = vsel %vm380_vm4, %v4009_v56, %v4182_v47  ;;  %v4190_v58 = vpop.permute.xlu2 %1877 }
 0x47a   : > { %v1895_v6 = vsel %vm361_vm3, %v4005_v24, %v4190_v58 }
 0x47e   : > { %1935 = vrot.lane.b32.xlu1 %v3923_v52, %s2745_s18  ;;  %1891 = vrot.lane.b32.xlu0 %v3923_v52, %s2743_s16 }
 0x47f   : > { %1861 = vrot.lane.b32.xlu2 %v3911_v2, %s2742_s15 }
 0x480   : > { %v4201_v28 = vpop.permute.xlu1 %1961  ;;  %v4203_v39 = vpop.permute.xlu0 %2171 }
 0x481   : > { %4691 = vst [vmem:[#allocation17_spill] sm:$0xff] %v4201_v28  ;;  %v1971_v56 = vsel %vm380_vm4, %v4043_v29, %v4201_v28  ;;  %v2185_v27 = vsel %vm439_vm9, %v4021_v43, %v4203_v39  ;;  %v4211_v53 = vpop.permute.xlu2 %1949 }
 0x482   : > { %4692 = vst [vmem:[#allocation18_spill] sm:$0xff] %v4203_v39  ;;  %v1967_v23 = vsel %vm380_vm4, %v4017_v25, %v4211_v53  ;;  %2481 = vmatpush.msrb.mxu3 %v1971_v56 }
 0x484   : > { %2482 = vmatpush.msrb.mxu3 %v1969_v36 }
 0x486   : > { %1963 = vrot.lane.b32.xlu1 %v3923_v52, %s2744_s17  ;;  %2179 = vrot.lane.b32.xlu0 %v3923_v52, %s2750_s23 }
 0x487   : > { %1791 = vrot.lane.b32.xlu2 %v3923_v52, %s4684_s25  ;;  %2483 = vmatpush.msrb.mxu3 %v1967_v23 }
 0x488   : > { %v1706_v28 = vpop.permute.xlu1 %1705  ;;  %v4222_v43 = vpop.permute.xlu0 %2099 }
 0x489   : > { %4693 = vst [vmem:[#allocation19_spill] sm:$0xff] %v4222_v43  ;;  %v4226_v29 = vsel %vm322_vm1, %v1706_v28, %v3947_v63  ;;  %v2113_v56 = vsel %vm419_vm10, %v4033_v1, %v4222_v43  ;;  %v4231_v36 = vpop.permute.xlu2 %1883  ;;  %2484 = vmatpush.msrb.mxu3 %v4077_v57 }
 0x48a   : > { %v1897_v39 = vsel %vm361_vm3, %v4029_v0, %v4231_v36 }
 0x48e   : > { %2107 = vrot.lane.b32.xlu1 %v3923_v52, %s2748_s21  ;;  %2247 = vrot.lane.b32.xlu0 %v3852_v61, %s4664_s10 }
 0x48f   : > { %1819 = vrot.lane.b32.xlu2 %v3923_v52, %s2741_s14  ;;  %s4694_s14 = smov 67  }
 0x490   : > { %v1730_v28 = vpop.permute.xlu1 %1729  ;;  %v4243_v63 = vpop.permute.xlu0 %1745 }
 0x491   : > { %v1750_v23 = vsel %vm322_vm1, %v4055_v33, %v1730_v28  ;;  %v1755_v1 = vsel %vm322_vm1, %v4062_v51, %v4243_v63  ;;  %v4250_v57 = vpop.permute.xlu2 %1889 }
 0x492   : > { %1775 = vst.msk [vmem:[#allocation2 + $0x10] sm:$0xff] %vm331_vm0, %v1750_v23  ;;  %v1899_v43 = vsel %vm361_vm3, %v4041_v21, %v4250_v57 }
 0x493   : > { %2485 = vmatpush.msrb.mxu3 %v1899_v43 }
 0x495   : > { %2486 = vmatpush.msrb.mxu3 %v1897_v39 }
 0x496   : > { %2249 = vrot.lane.b32.xlu1 %v3891_v34, %s4664_s10  ;;  %2027 = vrot.lane.b32.xlu0 %v3875_v9, %s2746_s19 }
 0x497   : > { %2025 = vrot.lane.b32.xlu2 %v3836_v50, %s2746_s19  ;;  %2487 = vmatpush.msrb.mxu3 %v1895_v6 }
 0x498   : > { %v1930_v33 = vpop.permute.xlu1 %1929  ;;  %v4262_v28 = vpop.permute.xlu0 %2177 }
 0x499   : > { %v4266_v23 = vsel %vm380_vm4, %v1930_v33, %v3955_v10  ;;  %v2187_v39 = vsel %vm439_vm9, %v4079_v4, %v4262_v28  ;;  %v4271_v43 = vpop.permute.xlu2 %2105  ;;  %2488 = vmatpush.msrb.mxu3 %v1893_v59  ;;  %v4358_v59 = vld [vmem:[%s4613_s6] sm:$0xff] }
 0x49a   : > { %v2115_v34 = vsel %vm419_vm10, %v4053_v38, %v4271_v43  ;;  %2441 = vmatpush.msrb.mxu1 %v2187_v39 }
 0x49b   : > { %2489 = vmatpush.msrb.mxu3 %v1827_v26 }
 0x49c   : > { %2442 = vmatpush.msrb.mxu1 %v2185_v27 }
 0x49d   : > { %2490 = vmatpush.msrb.mxu3 %v1825_v40 }
 0x49e   : > { %2101 = vrot.lane.b32.xlu1 %v3911_v2, %s2748_s21  ;;  %2241 = vrot.lane.b32.xlu0 %v3836_v50, %s4664_s10 }
 0x49f   : > { %2133 = vrot.lane.b32.xlu2 %v3836_v50, %s2749_s22  ;;  %2443 = vmatpush.msrb.mxu1 %v4142_v49 }
 0x4a0   : > { %v1946_v10 = vpop.permute.xlu1 %1945  ;;  %v4283_v6 = vpop.permute.xlu0 %2033  ;;  %2491 = vmatpush.msrb.mxu3 %v4116_v60 }
 0x4a1   : > { %v1966_v27 = vsel %vm380_vm4, %v4072_v12, %v1946_v10  ;;  %v2043_v38 = vsel %vm399_vm11, %v4101_v8, %v4283_v6  ;;  %v1786_v4 = vpop.permute.xlu2 %1785  ;;  %2444 = vmatpush.msrb.mxu1 %v4099_v18  ;;  %v4696_v10 = vld [vmem:[#allocation11_spill] sm:$0xff] }
 0x4a2   : > { %1991 = vst.msk [vmem:[#allocation2 + $0x130] sm:$0xff] %vm331_vm0, %v1966_v27  ;;  %v4295_v26 = vsel %vm342_vm2, %v1786_v4, %v3973_v55  ;;  %2492 = vmatpush.msrb.mxu3 %v4094_v62 }
 0x4a3   : > { %2445 = vmatpush.msrb.mxu1 %v2115_v34 }
 0x4a4   : > { %2493 = vmatpush.msrb.mxu3 %v1755_v1 }
 0x4a5   : > { %2446 = vmatpush.msrb.mxu1 %v2113_v56 }
 0x4a6   : > { %2243 = vrot.lane.b32.xlu1 %v3875_v9, %s4664_s10  ;;  %2021 = vrot.lane.b32.xlu0 %v3863_v3, %s2746_s19 }
 0x4a7   : > { %2019 = vrot.lane.b32.xlu2 %v3822_v13, %s2746_s19  ;;  %2494 = vmatpush.msrb.mxu3 %v4165_v48 }
 0x4a8   : > { %v1736_v12 = vpop.permute.xlu1 %1735  ;;  %v1858_v18 = vpop.permute.xlu0 %1857  ;;  %2447 = vmatpush.msrb.mxu1 %v4137_v30 }
 0x4a9   : > { %v1752_v55 = vsel %vm322_vm1, %v4111_v45, %v1736_v12  ;;  %v4310_v62 = vsel %vm361_vm3, %v1858_v18, %v3971_v7  ;;  %v1802_v9 = vpop.permute.xlu2 %1801  ;;  %2495 = vmatpush.msrb.mxu3 %v4121_v20  ;;  %v4698_v12 = vld [vmem:[#allocation9_spill] sm:$0xff] }
 0x4aa   : > { %1778 = vst.msk [vmem:[#allocation2 + $0x28] sm:$0xff] %vm331_vm0, %v1752_v55  ;;  %v1822_v8 = vsel %vm342_vm2, %v4087_v19, %v1802_v9  ;;  %2448 = vmatpush.msrb.mxu1 %v4172_v14 }
 0x4ab   : > { %2496 = vmatpush.msrb.mxu3 %v4060_v22  ;;  %1847 = vst.msk [vmem:[#allocation2 + $0x70] sm:$0xff] %vm331_vm0, %v1822_v8 }
 0x4ac   : > { %2449 = vmatpush.msrb.mxu1 %v2043_v38  ;;  %2497 = vmatmul.f32.vlgmr.msrb.gmra.mxu3 %v4358_v59  ;;  %v4697_v38 = vld [vmem:[#allocation18_spill] sm:$0xff] }
 0x4ae   : > { %2095 = vrot.lane.b32.xlu1 %v3899_v37, %s2748_s21  ;;  %2235 = vrot.lane.b32.xlu0 %v3822_v13, %s4664_s10 }
 0x4af   : > { %2131 = vrot.lane.b32.xlu2 %v3822_v13, %s2749_s22 }
 0x4b0   : > { %v1860_v7 = vpop.permute.xlu1 %1859  ;;  %v1874_v45 = vpop.permute.xlu0 %1873 }
 0x4b1   : > { %v4327_v19 = vsel %vm361_vm3, %v1860_v7, %v4005_v24  ;;  %v1894_v14 = vsel %vm361_vm3, %v4144_v44, %v1874_v45  ;;  %v1708_v22 = vpop.permute.xlu2 %1707  ;;  %v4699_v45 = vld [vmem:[#allocation13_spill] sm:$0xff] }
 0x4b2   : > { %v4333_v60 = vsel %vm322_vm1, %v1708_v22, %v3975_v16  ;;  %1919 = vst.msk [vmem:[#allocation2 + $0xd0] sm:$0xff] %vm331_vm0, %v1894_v14  ;;  %v4700_v22 = vld [vmem:[#allocation12_spill] sm:$0xff] }
 0x4b6   : > { %2237 = vrot.lane.b32.xlu1 %v3863_v3, %s4664_s10  ;;  %2013 = vrot.lane.b32.xlu0 %v3810_v17, %s2746_s19 }
 0x4b7   : > { %2251 = vrot.lane.b32.xlu2 %v3923_v52, %s4664_s10 }
 0x4b8   : > { %v1952_v24 = vpop.permute.xlu1 %1951  ;;  %v2162_v20 = vpop.permute.xlu0 %2161 }
 0x4b9   : > { %v1968_v30 = vsel %vm380_vm4, %v4211_v53, %v1952_v24  ;;  %v4346_v16 = vsel %vm439_vm9, %v4089_v42, %v2162_v20  ;;  %v2213_v49 = vsel %vm448_vm8, %v2162_v20, %v3995_v46  ;;  %v1808_v44 = vpop.permute.xlu2 %1807 }
 0x4ba   : > { %1994 = vst.msk [vmem:[#allocation2 + $0x148] sm:$0xff] %vm331_vm0, %v1968_v30  ;;  %v1824_v3 = vsel %vm342_vm2, %v4109_v11, %v1808_v44  ;;  %v4702_v44 = vld [vmem:[#allocation10_spill] sm:$0xff] }
 0x4bb   : > { %2219 = vst.msk [vmem:[#allocation2 + $0x2b0] sm:$0xff] %vm331_vm0, %v2213_v49  ;;  %v4701_v49 = vld [vmem:[#allocation16_spill] sm:$0xff] }
 0x4bc   : > { %1850 = vst.msk [vmem:[#allocation2 + $0x88] sm:$0xff] %vm331_vm0, %v1824_v3 }
 0x4be   : > { %2015 = vrot.lane.b32.xlu1 %v3848_v54, %s2746_s19  ;;  %2129 = vrot.lane.b32.xlu0 %v3810_v17, %s2749_s22  ;;  %s4709_s22 = smul.u32 24, %s4714_s28 }
 0x4bf   : > { %2089 = vrot.lane.b32.xlu2 %v3883_v15, %s2748_s21 }
 0x4c0   : > { %v1742_v46 = vpop.permute.xlu1 %1741  ;;  %v1788_v42 = vpop.permute.xlu0 %1787 }
 0x4c1   : > { %v1754_v11 = vsel %vm322_vm1, %v4157_v32, %v1742_v46  ;;  %v4371_v53 = vsel %vm342_vm2, %v1788_v42, %v3985_v5  ;;  %v1932_v40 = vpop.permute.xlu2 %1931 }
 0x4c2   : > { %1781 = vst.msk [vmem:[#allocation2 + $0x40] sm:$0xff] %vm331_vm0, %v1754_v11  ;;  %v4376_v48 = vsel %vm380_vm4, %v1932_v40, %v4017_v25 }
 0x4c6   : > { %2229 = vrot.lane.b32.xlu1 %v3810_v17, %s4664_s10  ;;  %2245 = vrot.lane.b32.xlu0 %v3911_v2, %s4664_s10 }
 0x4c7   : > { %2231 = vrot.lane.b32.xlu2 %v3848_v54, %s4664_s10 }
 0x4c8   : > { %v1790_v32 = vpop.permute.xlu1 %1789  ;;  %v1880_v56 = vpop.permute.xlu0 %1879 }
 0x4c9   : > { %v4386_v5 = vsel %vm342_vm2, %v1790_v32, %v4019_v41  ;;  %v1896_v1 = vsel %vm361_vm3, %v4190_v58, %v1880_v56  ;;  %v2168_v25 = vpop.permute.xlu2 %2167  ;;  %v4704_v56 = vld [vmem:[#allocation7_spill] sm:$0xff] }
 0x4ca   : > { %v4392_v33 = vsel %vm439_vm9, %v4133_v31, %v2168_v25  ;;  %v2214_v39 = vsel %vm448_vm8, %v2168_v25, %v4007_v35  ;;  %1922 = vst.msk [vmem:[#allocation2 + $0xe8] sm:$0xff] %vm331_vm0, %v1896_v1  ;;  %v4695_v31 = vld [vmem:[#allocation15_spill] sm:$0xff] }
 0x4cb   : > { %2222 = vst.msk [vmem:[#allocation2 + $0x2c8] sm:$0xff] %vm331_vm0, %v2214_v39 }
 0x4ce   : > { %2035 = vrot.lane.b32.xlu1 %v3923_v52, %s2746_s19  ;;  %2239 = vrot.lane.b32.xlu0 %v3899_v37, %s4664_s10 }
 0x4cf   : > { %2063 = vrot.lane.b32.xlu2 %v3852_v61, %s4694_s14 }
 0x4d0   : > { %v1958_v54 = vpop.permute.xlu1 %1957  ;;  %v1710_v58 = vpop.permute.xlu0 %1709 }
 0x4d1   : > { %v1970_v41 = vsel %vm380_vm4, %v4182_v47, %v1958_v54  ;;  %v4408_v35 = vsel %vm322_vm1, %v1710_v58, %v4695_v31  ;;  %v1814_v34 = vpop.permute.xlu2 %1813  ;;  %v4706_v31 = vld [vmem:[#allocation19_spill] sm:$0xff] }
 0x4d2   : > { %1997 = vst.msk [vmem:[#allocation2 + $0x160] sm:$0xff] %vm331_vm0, %v1970_v41  ;;  %v1826_v52 = vsel %vm342_vm2, %v4696_v10, %v1814_v34 }
 0x4d3   : > { %1853 = vst.msk [vmem:[#allocation2 + $0xa0] sm:$0xff] %vm331_vm0, %v1826_v52 }
 0x4d6   : > { %2029 = vrot.lane.b32.xlu1 %v3911_v2, %s2746_s19  ;;  %2233 = vrot.lane.b32.xlu0 %v3883_v15, %s4664_s10 }
 0x4d7   : > { %2061 = vrot.lane.b32.xlu2 %v3836_v50, %s4694_s14 }
 0x4d8   : > { %v2174_v47 = vpop.permute.xlu1 %2173  ;;  %v1886_v27 = vpop.permute.xlu0 %1885 }
 0x4d9   : > { %v4422_v4 = vsel %vm439_vm9, %v4697_v38, %v2174_v47  ;;  %v2215_v18 = vsel %vm448_vm8, %v2174_v47, %v4698_v12  ;;  %v1898_v55 = vsel %vm361_vm3, %v4231_v36, %v1886_v27  ;;  %v1862_v9 = vpop.permute.xlu2 %1861  ;;  %v4707_v38 = vld [vmem:[#allocation8_spill] sm:$0xff] }
 0x4da   : > { %v1915_v2 = vsel %vm361_vm3, %v1862_v9, %v4029_v0  ;;  %2225 = vst.msk [vmem:[#allocation2 + $0x2e0] sm:$0xff] %vm331_vm0, %v2215_v18  ;;  %v4708_v18 = vld [vmem:[#allocation14_spill] sm:$0xff] }
 0x4db   : > { %1925 = vst.msk [vmem:[#allocation2 + $0x100] sm:$0xff] %vm331_vm0, %v1898_v55 }
 0x4de   : > { %2023 = vrot.lane.b32.xlu1 %v3899_v37, %s2746_s19  ;;  %2279 = vrot.lane.b32.xlu0 %v3852_v61, %s4665_s30 }
 0x4df   : > { %2059 = vrot.lane.b32.xlu2 %v3822_v13, %s4694_s14 }
 0x4e0   : > { %v1712_v8 = vpop.permute.xlu1 %1711  ;;  %v1934_v7 = vpop.permute.xlu0 %1933 }
 0x4e1   : > { %v1772_v36 = vsel %vm322_vm1, %v1712_v8, %v4062_v51  ;;  %v1987_v0 = vsel %vm380_vm4, %v1934_v7, %v4699_v45  ;;  %v1792_v14 = vpop.permute.xlu2 %1791 }
 0x4e2   : > { %v1844_v24 = vsel %vm342_vm2, %v1792_v14, %v4700_v22 }
 0x4e6   : > { %2017 = vrot.lane.b32.xlu1 %v3883_v15, %s2746_s19  ;;  %2277 = vrot.lane.b32.xlu0 %v3836_v50, %s4665_s30  ;;  %v2412_v50 = vld [vmem:[%s4614_s7] sm:$0xff] }
 0x4e7   : > { %2057 = vrot.lane.b32.xlu2 %v3810_v17, %s4694_s14 }
 0x4e8   : > { %v1748_v61 = vpop.permute.xlu1 %1747  ;;  %v1864_v37 = vpop.permute.xlu0 %1863 }
 0x4e9   : > { %v1756_v51 = vsel %vm322_vm1, %v4243_v63, %v1748_v61  ;;  %v1916_v20 = vsel %vm361_vm3, %v1864_v37, %v4041_v21  ;;  %v1820_v30 = vpop.permute.xlu2 %1819  ;;  %v2361_v61 = vld [vmem:[#allocation2 + $0x1c8] sm:$0xff]  ;;  %v2358_v37 = vld [vmem:[#allocation2 + $0x1b0] sm:$0xff] }
 0x4ea   : > { %1784 = vst.msk [vmem:[#allocation2 + $0x58] sm:$0xff] %vm331_vm0, %v1756_v51  ;;  %v1828_v15 = vsel %vm342_vm2, %v4701_v49, %v1820_v30  ;;  %v2355_v51 = vld [vmem:[#allocation2 + $0x198] sm:$0xff]  ;;  %v4535_v49 = vld [vmem:[%s4613_s6 + $0x8] sm:$0xff] }
 0x4eb   : > { %1856 = vst.msk [vmem:[#allocation2 + $0xb8] sm:$0xff] %vm331_vm0, %v1828_v15 }
 0x4ee   : > { %2275 = vrot.lane.b32.xlu1 %v3822_v13, %s4665_s30  ;;  %2415 = vperm.xlu0 %2728, %v2412_v50  }
 0x4ef   : > { %2273 = vrot.lane.b32.xlu2 %v3810_v17, %s4665_s30  ;;  %v4703_v17 = vld [vmem:[#allocation17_spill] sm:$0xff]  ;;  %s305_s30 = scalar_lea.vmem %s4615_s8, %s4709_s22 }
 0x4f0   : > { %v1936_v21 = vpop.permute.xlu1 %1935  ;;  %v1892_v63 = vpop.permute.xlu0 %1891 }
 0x4f1   : > { %v1988_v3 = vsel %vm380_vm4, %v1936_v21, %v4702_v44  ;;  %v1900_v46 = vsel %vm361_vm3, %v4250_v57, %v1892_v63  ;;  %v2026_v42 = vpop.permute.xlu2 %2025  ;;  %v2352_v63 = vld [vmem:[#allocation2 + $0x180] sm:$0xff]  ;;  %v4546_v44 = vld [vmem:[%s4613_s6 + $0x10] sm:$0xff] }
 0x4f2   : > { %2421 = vmatpush.msrb.mxu0 %v1988_v3  ;;  %1928 = vst.msk [vmem:[#allocation2 + $0x118] sm:$0xff] %vm331_vm0, %v1900_v46 }
 0x4f4   : > { %2422 = vmatpush.msrb.mxu0 %v1987_v0 }
 0x4f6   : > { %2423 = vmatpush.msrb.mxu0 %v4376_v48 }
 0x4f8   : > { %v1964_v13 = vpop.permute.xlu1 %1963  ;;  %v2180_v11 = vpop.permute.xlu0 %2179  ;;  %2424 = vmatpush.msrb.mxu0 %v4266_v23 }
 0x4f9   : > { %v1972_v40 = vsel %vm380_vm4, %v4703_v17, %v1964_v13  ;;  %v2188_v32 = vsel %vm439_vm9, %v4262_v28, %v2180_v11  ;;  %v2216_v57 = vsel %vm448_vm8, %v2180_v11, %v4704_v56  ;;  %v2134_v1 = vpop.permute.xlu2 %2133  ;;  %v4705_v28 = vld [vmem:[#allocation6_spill] sm:$0xff]  ;;  %v2348_v13 = vld [vmem:[#allocation2 + $0x160] sm:$0xff]  ;;  %v2393_v11 = vld [vmem:[#allocation2 + $0x2c8] sm:$0xff] }
 0x4fa   : > { %2000 = vst.msk [vmem:[#allocation2 + $0x178] sm:$0xff] %vm331_vm0, %v1972_v40  ;;  %2425 = vmatpush.msrb.mxu0 %v1916_v20 }
 0x4fb   : > { %2228 = vst.msk [vmem:[#allocation2 + $0x2f8] sm:$0xff] %vm331_vm0, %v2216_v57 }
 0x4fc   : > { %2426 = vmatpush.msrb.mxu0 %v1915_v2 }
 0x4fe   : > { %2427 = vmatpush.msrb.mxu0 %v4327_v19 }
 0x500   : > { %v2108_v48 = vpop.permute.xlu1 %2107  ;;  %v2248_v23 = vpop.permute.xlu0 %2247  ;;  %2428 = vmatpush.msrb.mxu0 %v4310_v62 }
 0x501   : > { %v2116_v25 = vsel %vm419_vm10, %v4271_v43, %v2108_v48  ;;  %v2144_v39 = vsel %vm428_vm6, %v2108_v48, %v4705_v28  ;;  %v2020_v54 = vpop.permute.xlu2 %2019  ;;  %v2351_v46 = vld [vmem:[#allocation2 + $0x178] sm:$0xff] }
 0x502   : > { %2429 = vmatpush.msrb.mxu0 %v1844_v24  ;;  %2156 = vst.msk [vmem:[#allocation2 + $0x298] sm:$0xff] %vm331_vm0, %v2144_v39  ;;  %v2399_v3 = vld [vmem:[#allocation2 + $0x2f8] sm:$0xff] }
 0x503   : > { %v2339_v39 = vld [vmem:[#allocation2 + $0x118] sm:$0xff] }
 0x504   : > { %2430 = vmatpush.msrb.mxu0 %v4386_v5 }
 0x506   : > { %2431 = vmatpush.msrb.mxu0 %v4371_v53 }
 0x508   : > { %v2250_v58 = vpop.permute.xlu1 %2249  ;;  %v4489_v19 = vpop.permute.xlu0 %2027  ;;  %2432 = vmatpush.msrb.mxu0 %v4295_v26 }
 0x509   : > { %v2259_v62 = vsel %vm459_vm7, %v2248_v23, %v2250_v58  ;;  %v2041_v43 = vsel %vm399_vm11, %v2026_v42, %v4489_v19  ;;  %v2132_v41 = vpop.permute.xlu2 %2131  ;;  %v2396_v42 = vld [vmem:[#allocation2 + $0x2e0] sm:$0xff]  ;;  %v2390_v23 = vld [vmem:[#allocation2 + $0x2b0] sm:$0xff]  ;;  %v2387_v28 = vld [vmem:[#allocation2 + $0x298] sm:$0xff] }
 0x50a   : > { %2433 = vmatpush.msrb.mxu0 %v1772_v36  ;;  %2450 = vmatpush.msrb.mxu1 %v2041_v43 }
 0x50b   : > { %2473 = vmatpush.msrb.mxu2 %v2259_v62 }
 0x50c   : > { %2434 = vmatpush.msrb.mxu0 %v4408_v35 }
 0x50e   : > { %2435 = vmatpush.msrb.mxu0 %v4333_v60 }
 0x510   : > { %v2102_v5 = vpop.permute.xlu1 %2101  ;;  %v2242_v53 = vpop.permute.xlu0 %2241  ;;  %2436 = vmatpush.msrb.mxu0 %v4226_v29 }
 0x511   : > { %v2114_v26 = vsel %vm419_vm10, %v4706_v31, %v2102_v5  ;;  %v2143_v34 = vsel %vm428_vm6, %v2102_v5, %v2134_v1  ;;  %v4501_v10 = vpop.permute.xlu2 %2251  ;;  %2437 = vmatmul.f32.vlgmr.msrb.gmra.mxu0 %v4358_v59 }
 0x512   : > { %v2260_v52 = vsel %vm459_vm7, %v2250_v58, %v4501_v10  ;;  %2501 = vmatpush.msra.mxu0 %v2188_v32  ;;  %2153 = vst.msk [vmem:[#allocation2 + $0x280] sm:$0xff] %vm331_vm0, %v2143_v34  ;;  %v2345_v32 = vld [vmem:[#allocation2 + $0x148] sm:$0xff] }
 0x513   : > { %2533 = vmatpush.msra.mxu3 %v2260_v52 }
 0x514   : > { %2502 = vmatpush.msra.mxu0 %v4422_v4 }
 0x516   : > { %2503 = vmatpush.msra.mxu0 %v4392_v33 }
 0x518   : > { %v2244_v29 = vpop.permute.xlu1 %2243  ;;  %v4509_v60 = vpop.permute.xlu0 %2021  ;;  %2504 = vmatpush.msra.mxu0 %v4346_v16 }
 0x519   : > { %v2257_v35 = vsel %vm459_vm7, %v2242_v53, %v2244_v29  ;;  %v2039_v47 = vsel %vm399_vm11, %v2020_v54, %v4509_v60  ;;  %v2090_v27 = vpop.permute.xlu2 %2089  ;;  %v2336_v54 = vld [vmem:[#allocation2 + $0x100] sm:$0xff] }
 0x51a   : > { %v2110_v12 = vsel %vm419_vm10, %v4707_v38, %v2090_v27  ;;  %2505 = vmatpush.msra.mxu0 %v2116_v25  ;;  %2451 = vmatpush.msrb.mxu1 %v2039_v47  ;;  %v2342_v25 = vld [vmem:[#allocation2 + $0x130] sm:$0xff]  ;;  %v2327_v47 = vld [vmem:[#allocation2 + $0xb8] sm:$0xff] }
 0x51b   : > { %2474 = vmatpush.msrb.mxu2 %v2257_v35 }
 0x51c   : > { %2506 = vmatpush.msra.mxu0 %v2114_v26 }
 0x520   : > { %v2096_v4 = vpop.permute.xlu1 %2095  ;;  %v2236_v33 = vpop.permute.xlu0 %2235 }
 0x521   : > { %v2112_v55 = vsel %vm419_vm10, %v4708_v18, %v2096_v4  ;;  %v2142_v16 = vsel %vm428_vm6, %v2096_v4, %v2132_v41  ;;  %v4520_v9 = vpop.permute.xlu2 %2231  ;;  %v2333_v41 = vld [vmem:[#allocation2 + $0xe8] sm:$0xff] }
 0x522   : > { %2507 = vmatpush.msra.mxu0 %v2112_v55  ;;  %2150 = vst.msk [vmem:[#allocation2 + $0x268] sm:$0xff] %vm331_vm0, %v2142_v16  ;;  %v2318_v16 = vld [vmem:[#allocation2 + $0x70] sm:$0xff] }
 0x524   : > { %2508 = vmatpush.msra.mxu0 %v2110_v12  ;;  %v2321_v12 = vld [vmem:[#allocation2 + $0x88] sm:$0xff] }
 0x528   : > { %v2238_v2 = vpop.permute.xlu1 %2237  ;;  %v2014_v8 = vpop.permute.xlu0 %2013 }
 0x529   : > { %v2255_v7 = vsel %vm459_vm7, %v2236_v33, %v2238_v2  ;;  %v2064_v36 = vpop.permute.xlu2 %2063  ;;  %v2381_v58 = vld [vmem:[#allocation2 + $0x268] sm:$0xff] }
 0x52a   : > { %2475 = vmatpush.msrb.mxu2 %v2255_v7  ;;  %v2309_v7 = vld [vmem:[#allocation2 + $0x28] sm:$0xff] }
 0x530   : > { %v4524_v45 = vpop.permute.xlu1 %2015  ;;  %v2130_v0 = vpop.permute.xlu0 %2129 }
 0x531   : > { %v2037_v14 = vsel %vm399_vm11, %v2014_v8, %v4524_v45  ;;  %v2141_v22 = vsel %vm428_vm6, %v2090_v27, %v2130_v0  ;;  %v2062_v24 = vpop.permute.xlu2 %2061 }
 0x532   : > { %2452 = vmatpush.msrb.mxu1 %v2037_v14  ;;  %2147 = vst.msk [vmem:[#allocation2 + $0x250] sm:$0xff] %vm331_vm0, %v2141_v22  ;;  %v2306_v22 = vld [vmem:[#allocation2 + $0x10] sm:$0xff] }
 0x534   : > { %2453 = vmatpush.msrb.mxu1 %v2361_v61  ;;  %v2359_v61 = vld [vmem:[#allocation2 + $0x1b8] sm:$0xff] }
 0x536   : > { %2454 = vmatpush.msrb.mxu1 %v2358_v37 }
 0x538   : > { %v2230_v20 = vpop.permute.xlu1 %2229  ;;  %v4530_v30 = vpop.permute.xlu0 %2245  ;;  %2455 = vmatpush.msrb.mxu1 %v2355_v51  ;;  %v2356_v51 = vld [vmem:[#allocation2 + $0x1a0] sm:$0xff] }
 0x539   : > { %v2253_v15 = vsel %vm459_vm7, %v2230_v20, %v4520_v9  ;;  %v2258_v50 = vsel %vm459_vm7, %v2244_v29, %v4530_v30  ;;  %v4541_v21 = vpop.permute.xlu2 %2059  ;;  %v2378_v34 = vld [vmem:[#allocation2 + $0x250] sm:$0xff] }
 0x53a   : > { %2456 = vmatpush.msrb.mxu1 %v2352_v63  ;;  %2476 = vmatpush.msrb.mxu2 %v2253_v15  ;;  %v2330_v29 = vld [vmem:[#allocation2 + $0xd0] sm:$0xff]  ;;  %v2353_v15 = vld [vmem:[#allocation2 + $0x188] sm:$0xff] }
 0x53b   : > { %2534 = vmatpush.msra.mxu3 %v2258_v50  ;;  %2457 = vmatmul.f32.vlgmr.msrb.gmra.mxu1 %v4535_v49  ;;  %v2357_v63 = vld [vmem:[#allocation2 + $0x1a8] sm:$0xff] }
 0x53c   : > { %2696 = vmatmul.msk.f32.vlgmr.msrb.gmra.mxu2 %vm1403_vm14, %v4546_v44  ;;  %2561 = vmatpush.msra.mxu1 %v2399_v3 }
 0x53d   : > { %2541 = vmatpush.msra.mxu2 %v2351_v46  ;;  %v2354_v46 = vld [vmem:[#allocation2 + $0x190] sm:$0xff] }
 0x53e   : > { %2562 = vmatpush.msra.mxu1 %v2396_v42 }
 0x53f   : > { %2542 = vmatpush.msra.mxu2 %v2348_v13 }
 0x540   : > { %v2036_v17 = vpop.permute.xlu1 %2035  ;;  %v4551_v40 = vpop.permute.xlu0 %2239  ;;  %2563 = vmatpush.msra.mxu1 %v2393_v11 }
 0x541   : > { %v2044_v56 = vsel %vm399_vm11, %v4283_v6, %v2036_v17  ;;  %v2072_v57 = vsel %vm408_vm5, %v2036_v17, %v2064_v36  ;;  %v2256_v1 = vsel %vm459_vm7, %v2238_v2, %v4551_v40  ;;  %v4558_v48 = vpop.permute.xlu2 %2057  ;;  %2543 = vmatpush.msra.mxu2 %v2345_v32  ;;  %v2384_v6 = vld [vmem:[#allocation2 + $0x280] sm:$0xff] }
 0x542   : > { %2564 = vmatpush.msra.mxu1 %v2390_v23  ;;  %2509 = vmatpush.msra.mxu0 %v2044_v56  ;;  %2084 = vst.msk [vmem:[#allocation2 + $0x238] sm:$0xff] %vm331_vm0, %v2072_v57  ;;  %v2312_v2 = vld [vmem:[#allocation2 + $0x40] sm:$0xff] }
 0x543   : > { %2544 = vmatpush.msra.mxu2 %v2342_v25  ;;  %2535 = vmatpush.msra.mxu3 %v2256_v1 }
 0x544   : > { %2565 = vmatpush.msra.mxu1 %v2387_v28 }
 0x545   : > { %2545 = vmatpush.msra.mxu2 %v2339_v39 }
 0x546   : > { %2566 = vmatpush.msra.mxu1 %v2384_v6 }
 0x547   : > { %2546 = vmatpush.msra.mxu2 %v2336_v54 }
 0x548   : > { %v2030_v62 = vpop.permute.xlu1 %2029  ;;  %v2234_v43 = vpop.permute.xlu0 %2233  ;;  %2567 = vmatpush.msra.mxu1 %v2381_v58  ;;  %v4711_v58 = vld [vmem:[#allocation4_spill] sm:$0xff] }
 0x549   : > { %v2042_v5 = vsel %vm399_vm11, %v4489_v19, %v2030_v62  ;;  %v2071_v53 = vsel %vm408_vm5, %v2030_v62, %v2062_v24  ;;  %v2254_v31 = vsel %vm459_vm7, %v4520_v9, %v2234_v43  ;;  %v2274_v26 = vpop.permute.xlu2 %2273  ;;  %2547 = vmatpush.msra.mxu2 %v2333_v41  ;;  %v2375_v35 = vld [vmem:[#allocation2 + $0x238] sm:$0xff]  ;;  %v2324_v19 = vld [vmem:[#allocation2 + $0xa0] sm:$0xff] }
 0x54a   : > { %v2285_v52 = vsel %vm468_vm12, %v2234_v43, %v2274_v26  ;;  %2568 = vmatpush.msra.mxu1 %v2378_v34  ;;  %2510 = vmatpush.msra.mxu0 %v2042_v5  ;;  %2081 = vst.msk [vmem:[#allocation2 + $0x220] sm:$0xff] %vm331_vm0, %v2071_v53  ;;  %v2315_v9 = vld [vmem:[#allocation2 + $0x58] sm:$0xff] }
 0x54b   : > { %2548 = vmatpush.msra.mxu2 %v2330_v29  ;;  %2536 = vmatpush.msra.mxu3 %v2254_v31  ;;  %2291 = vst.msk [vmem:[#allocation2 + $0x310] sm:$0xff] %vm331_vm0, %v2285_v52  ;;  %v4712_v52 = vld [vmem:[#allocation5_spill] sm:$0xff] }
 0x54c   : > { %2569 = vmatpush.msra.mxu1 %v2375_v35  ;;  %2697 = vmatmul.msk.f32.vlgmr.msra.gmra.mxu3 %vm1403_vm14, %v4546_v44 }
 0x54d   : > { %2549 = vmatpush.msra.mxu2 %v2327_v47 }
 0x54f   : > { %2550 = vmatpush.msra.mxu2 %v2324_v19 }
 0x550   : > { %v2024_v27 = vpop.permute.xlu1 %2023  ;;  %v2280_v38 = vpop.permute.xlu0 %2279 }
 0x551   : > { %v2040_v4 = vsel %vm399_vm11, %v4509_v60, %v2024_v27  ;;  %v2070_v33 = vsel %vm408_vm5, %v2024_v27, %v4541_v21  ;;  %v2288_v18 = vsel %vm468_vm12, %v4501_v10, %v2280_v38  ;;  %2551 = vmatpush.msra.mxu2 %v2321_v12  ;;  %v2372_v55 = vld [vmem:[#allocation2 + $0x220] sm:$0xff]  ;;  %v2363_v21 = vld [vmem:[#allocation2 + $0x1d8] sm:$0xff] }
 0x552   : > { %2511 = vmatpush.msra.mxu0 %v2040_v4  ;;  %2078 = vst.msk [vmem:[#allocation2 + $0x208] sm:$0xff] %vm331_vm0, %v2070_v33  ;;  %2570 = vmatpush.msra.mxu1 %v2372_v55  ;;  %v2402_v42 = vld [vmem:[#allocation2 + $0x310] sm:$0xff] }
 0x553   : > { %2552 = vmatpush.msra.mxu2 %v2318_v16  ;;  %2300 = vst.msk [vmem:[#allocation2 + $0x358] sm:$0xff] %vm331_vm0, %v2288_v18 }
 0x555   : > { %2553 = vmatpush.msra.mxu2 %v2315_v9 }
 0x557   : > { %2554 = vmatpush.msra.mxu2 %v2312_v2 }
 0x558   : > { %v2018_v60 = vpop.permute.xlu1 %2017  ;;  %v2278_v8 = vpop.permute.xlu0 %2277 }
 0x559   : > { %v2038_v10 = vsel %vm399_vm11, %v4524_v45, %v2018_v60  ;;  %v2069_v36 = vsel %vm408_vm5, %v2018_v60, %v4558_v48  ;;  %v2287_v0 = vsel %vm468_vm12, %v4530_v30, %v2278_v8  ;;  %2555 = vmatpush.msra.mxu2 %v2309_v7  ;;  %v2369_v14 = vld [vmem:[#allocation2 + $0x208] sm:$0xff]  ;;  %v2362_v45 = vld [vmem:[#allocation2 + $0x1d0] sm:$0xff]  ;;  %v4710_v48 = vld [vmem:[#allocation3_spill] sm:$0xff] }
 0x55a   : > { %2512 = vmatpush.msra.mxu0 %v2038_v10  ;;  %2075 = vst.msk [vmem:[#allocation2 + $0x1f0] sm:$0xff] %vm331_vm0, %v2069_v36  ;;  %2571 = vmatpush.msra.mxu1 %v2369_v14  ;;  %v2411_v24 = vld [vmem:[#allocation2 + $0x358] sm:$0xff] }
 0x55b   : > { %2556 = vmatpush.msra.mxu2 %v2306_v22  ;;  %2297 = vst.msk [vmem:[#allocation2 + $0x340] sm:$0xff] %vm331_vm0, %v2287_v0  ;;  %2593 = vmatpush.msrb.mxu3 %v2411_v24 }
 0x55c   : > { %2557 = vmatmul.f32.vlgmr.msra.gmra.mxu2 %v4358_v59  ;;  %2513 = vmatpush.msra.mxu0 %v2362_v45  ;;  %v2360_v59 = vld [vmem:[#allocation2 + $0x1c0] sm:$0xff] }
 0x55e   : > { %2514 = vmatpush.msra.mxu0 %v2359_v61 }
 0x560   : > { %v2276_v37 = vpop.permute.xlu1 %2275  ;;  %2515 = vmatpush.msra.mxu0 %v2356_v51  ;;  %v2416_v11 = vpop.permute.xlu0 %2415 }
 0x561   : > { %v2286_v20 = vsel %vm468_vm12, %v4551_v40, %v2276_v37  ;;  %v2366_v30 = vld [vmem:[#allocation2 + $0x1f0] sm:$0xff] }
 0x562   : > { %2294 = vst.msk [vmem:[#allocation2 + $0x328] sm:$0xff] %vm331_vm0, %v2286_v20  ;;  %2572 = vmatpush.msra.mxu1 %v2366_v30  ;;  %v2408_v50 = vld [vmem:[#allocation2 + $0x340] sm:$0xff]  ;;  %2516 = vmatpush.msra.mxu0 %v2353_v15 }
 0x563   : > { %2594 = vmatpush.msrb.mxu3 %v2408_v50  ;;  %2517 = vmatmul.f32.vlgmr.msra.gmra.mxu0 %v4535_v49 }
 0x564   : > { %2573 = vmatpush.msra.mxu1 %v2363_v21 }
 0x566   : > { %2574 = vmatpush.msra.mxu1 %v2360_v59 }
 0x568   : > { %2575 = vmatpush.msra.mxu1 %v2357_v63 }
 0x569   : > { %v2405_v3 = vld [vmem:[#allocation2 + $0x328] sm:$0xff] }
 0x56a   : > { %2595 = vmatpush.msrb.mxu3 %v2405_v3  ;;  %2576 = vmatpush.msra.mxu1 %v2354_v46 }
 0x56b   : > { %2577 = vmatmul.f32.vlgmr.msra.gmra.mxu1 %v4535_v49  ;;  %v2498_v49 = vpop.f32.mrf.mxu3 }
 0x56c   : > { %2596 = vmatpush.msrb.mxu3 %v2402_v42  ;;  %v2499_v25 = vadd.f32 %v2498_v49, %v2416_v11 }
 0x56d   : > { %2698 = vmatmul.msk.f32.vlgmr.msrb.gmra.mxu3 %vm1403_vm14, %v4546_v44 }
 0x58e   : > { %v2438_v13 = vpop.f32.mrf.mxu0 }
 0x58f   : > { %v2439_v40 = vadd.f32 %v2438_v13, %v2416_v11 }
 0x5b8   : > { %v2458_v17 = vpop.f32.mrf.mxu1 }
 0x5b9   : > { %v2459_v32 = vadd.f32 %v2458_v17, %v2439_v40 }
 0x5bf   : > { %v2478_v56 = vpop.f32.mrf.mxu2 }
 0x5c0   : > { %v2479_v57 = vadd.f32 %v2478_v56, %v2459_v32 }
 0x5c2   : > { %v2601_v1 = vmax.f32 %v2479_v57, 0.0 }
 0x5c4   : > { %v2604_v23 = vmul.f32 %v2601_v1, %v4710_v48 }
 0x5c6   : > { %2607 = vst [vmem:[%s305_s30] sm:$0xff] %v2604_v23 }
 0x5cf   : > { %v2538_v44 = vpop.f32.mrf.mxu3 }
 0x5df   : > { %v2558_v43 = vpop.f32.mrf.mxu2 }
 0x5e0   : > { %v2518_v28 = vpop.f32.mrf.mxu0  ;;  %v2559_v5 = vadd.f32 %v2558_v43, %v2416_v11 }
 0x5e1   : > { %v2519_v39 = vadd.f32 %v2518_v28, %v2499_v25 }
 0x5e3   : > { %v2539_v6 = vadd.f32 %v2538_v44, %v2519_v39 }
 0x5e5   : > { %v2602_v54 = vmax.f32 %v2539_v6, 0.0 }
 0x5e7   : > { %v2605_v62 = vmul.f32 %v2602_v54, %v4711_v58 }
 0x5e8   : > { %v2578_v41 = vpop.f32.mrf.mxu1 }
 0x5e9   : > { %2608 = vst [vmem:[%s305_s30 + $0x8] sm:$0xff] %v2605_v62  ;;  %v2579_v53 = vadd.f32 %v2578_v41, %v2559_v5 }
 0x5f0   : > { %v2598_v31 = vpop.f32.mrf.mxu3 }
 0x5f1   : > { %v2599_v26 = vadd.f32 %v2598_v31, %v2579_v53 }
 0x5f3   : > { %v2603_v34 = vmax.f32 %v2599_v26, 0.0 }
 0x5f5   : > { %v2606_v29 = vmul.f32 %v2603_v34, %v4712_v52 }
 0x5f7   : > { %2609 = vst.msk [vmem:[%s305_s30 + $0x10] sm:$0xff] %vm331_vm0, %v2606_v29 }
 0x5f8 PF: > { %s18_s27 = sadd.s32 1, %s2736_s27  }
 0x5f9   : > { %p15_p4 = scmp.ge.s32.totalorder %s18_s27, 4  }
 0x5fb   :  { %17 = sbr.rel (!%p15_p4) target bundleno = 1 (0x1), region = 82 }

</bundles_post_ra>
